<compile_context>
chip_gen: v7x
topology: tpu7x:2x2x1
jax: 0.10.0
libtpu: 0.0.40
codegen_flags: <defaults>
</compile_context>

<pallas_src>
import numpy as np
import jax
import jax.numpy as jnp
from jax.experimental import pallas as pl
from jax.experimental.pallas import tpu as pltpu


_TILE_BYTES = 1 << 20     # per-block budget (~1 MiB): 2 in + 2 out double-buffers
                          # fit every generation's scoped-VMEM default.
_BYPASS_BYTES = 1 << 20   # below this, XLA's fused broadcast-multiply is already
                          # at roofline; kernel launch is pure overhead.


def _drop_path_kernel(x_ref, s_ref, o_ref):
    # (TB, TM) * (TB, 1) lane-broadcast multiply — single memory-bound VPU pass.
    o_ref[...] = x_ref[...] * s_ref[...]


def _pick_tiles(B, M, itemsize):
    """Dtype-aware, VMEM-bounded (TB, TM) tile selection."""
    sub = max(8, 32 // itemsize)          # packed sublanes: 8 f32, 16 bf16, 32 i8/fp8
    TB = B if B <= sub else sub
    max_tm = _TILE_BYTES // (TB * itemsize)
    if M <= max_tm:
        TM = M                            # full last dim (always layout-legal)
        # Lane dim fully covered: grow TB (stays a multiple of 8) to fill budget.
        while TB * 2 <= B and (TB * 2) * TM * itemsize <= _TILE_BYTES:
            TB *= 2
    else:
        TM = max(128, (max_tm // 128) * 128)   # lane-aligned -> unmasked stores
    return TB, TM


def _drop_path_scale_mul(x, scale):
    """out[b, ...] = x[b, ...] * scale[b], via a lane-dense Pallas kernel."""
    orig_shape = x.shape
    B = int(orig_shape[0])
    M = 1
    for d in orig_shape[1:]:
        M *= int(d)
    M = max(M, 1)
    itemsize = jnp.dtype(x.dtype).itemsize

    # Small-tensor fast path (also guarantees the kernel path has >= 2 grid steps).
    if B * M * itemsize <= _BYPASS_BYTES:
        bshape = (B,) + (1,) * (len(orig_shape) - 1)
        return x * scale.reshape(bshape).astype(x.dtype)

    x2 = x.reshape(B, M)
    s2 = scale.reshape(B, 1).astype(x.dtype)

    TB, TM = _pick_tiles(B, M, itemsize)
    # Batch outer, lanes inner: scale block index constant across the inner loop.
    grid = (pl.cdiv(B, TB), pl.cdiv(M, TM))

    f = pl.pallas_call(
        _drop_path_kernel,
        out_shape=jax.ShapeDtypeStruct((B, M), x.dtype),
        grid_spec=pltpu.PrefetchScalarGridSpec(
            num_scalar_prefetch=0,
            grid=grid,
            in_specs=[
                pl.BlockSpec((TB, TM), lambda i, j: (i, j)),   # x slab
                pl.BlockSpec((TB, 1), lambda i, j: (i, 0)),    # per-sample scale
            ],
            out_specs=pl.BlockSpec((TB, TM), lambda i, j: (i, j)),
        ),
        input_output_aliases={0: 0},   # in-place scale: no extra HBM output alloc
        compiler_params=pltpu.CompilerParams(
            dimension_semantics=("parallel", "parallel")),
    )
    return f(x2, s2).reshape(orig_shape)


def drop_path(x, key, drop_prob: float = 0.0, training: bool = False,
              scale_by_keep: bool = True):
    """JAX/Pallas port of timm's drop_path (per-sample stochastic depth)."""
    if drop_prob == 0.0 or not training:
        return x                      # pure identity, matches torch fast path
    keep_prob = 1.0 - drop_prob
    B = x.shape[0]
    # TODO(synk): torch draws the mask with its own RNG (bernoulli_); here we
    # use jax.random with an explicit key — same distribution, different bits.
    mask = jax.random.bernoulli(key, p=keep_prob, shape=(B,)).astype(x.dtype)
    if keep_prob > 0.0 and scale_by_keep:
        mask = mask / keep_prob
    return _drop_path_scale_mul(x, mask)


def _reference(x, key, drop_prob, scale_by_keep=True):
    keep_prob = 1.0 - drop_prob
    B = x.shape[0]
    mask = jax.random.bernoulli(key, p=keep_prob, shape=(B,)).astype(x.dtype)
    if keep_prob > 0.0 and scale_by_keep:
        mask = mask / keep_prob
    bshape = (B,) + (1,) * (x.ndim - 1)
    return x * mask.reshape(bshape)


if __name__ == "__main__":
    drop_prob = 0.25
    key = jax.random.PRNGKey(0)
    kx1, kx2, kx3, kx4, km = jax.random.split(key, 5)

    # --- 1) main kernel path (f32): tiles both grid axes, grid = (2, 4) ---
    x1 = jax.random.normal(kx1, (16, 512, 256), jnp.float32)          # 8 MiB
    ref1 = np.asarray(_reference(x1, km, drop_prob))
    out1 = jax.block_until_ready(drop_path(x1, km, drop_prob, training=True))
    np.testing.assert_allclose(np.asarray(out1), ref1, atol=1e-6, rtol=1e-6)

    # --- 2) ragged batch / lane dims (f32): cdiv grid with padded edge blocks ---
    x2 = jax.random.normal(kx2, (10, 300, 130), jnp.float32)          # ~1.5 MiB
    ref2 = np.asarray(_reference(x2, km, drop_prob))
    out2 = jax.block_until_ready(drop_path(x2, km, drop_prob, training=True))
    np.testing.assert_allclose(np.asarray(out2), ref2, atol=1e-6, rtol=1e-6)

    # --- 3) bf16 path: dtype-aware TB=16 packed-sublane tile ---
    x3 = jax.random.normal(kx3, (24, 197, 384), jnp.float32).astype(jnp.bfloat16)
    ref3 = np.asarray(_reference(x3, km, drop_prob).astype(jnp.float32))
    out3 = jax.block_until_ready(drop_path(x3, km, drop_prob, training=True))
    np.testing.assert_allclose(np.asarray(out3.astype(jnp.float32)), ref3,
                               atol=1e-2, rtol=1e-2)

    # --- 4) tiny tensor: plain-JAX bypass; eval / drop_prob=0: exact identity ---
    x4 = jax.random.normal(kx4, (2, 8, 32), jnp.float32)
    ref4 = np.asarray(_reference(x4, km, drop_prob))
    out4 = jax.block_until_ready(drop_path(x4, km, drop_prob, training=True))
    np.testing.assert_allclose(np.asarray(out4), ref4, atol=1e-6, rtol=1e-6)
    np.testing.assert_allclose(
        np.asarray(drop_path(x4, km, drop_prob, training=False)), np.asarray(x4))
    np.testing.assert_allclose(
        np.asarray(drop_path(x4, km, 0.0, training=True)), np.asarray(x4))

    print("KERNEL_OK")
</pallas_src>

<mosaic_0001>
module attributes {stable_mosaic.version = 11 : i64} {
  func.func @_drop_path_kernel(%arg0: i32, %arg1: i32, %arg2: memref<8x32768xf32, #tpu.memory_space<vmem>>, %arg3: memref<8x1xf32, #tpu.memory_space<vmem>>, %arg4: memref<8x32768xf32, #tpu.memory_space<vmem>>) attributes {dimension_semantics = [#tpu.dimension_semantics<parallel>, #tpu.dimension_semantics<parallel>], iteration_bounds = array<i64: 2, 4>, scalar_prefetch = 0 : i64, scratch_operands = 0 : i64, tpu.core_type = #tpu.core_type<tc>, window_params = [{transform_indices = @transform_0, window_bounds = array<i64: 8, 32768>}, {transform_indices = @transform_1, window_bounds = array<i64: 8, 1>}, {transform_indices = @transform_2, window_bounds = array<i64: 8, 32768>}]} {
    %c0 = arith.constant 0 : index
    %c0_0 = arith.constant 0 : index
    %0 = vector.load %arg2[%c0, %c0_0] : memref<8x32768xf32, #tpu.memory_space<vmem>>, vector<8x32768xf32>
    %c0_1 = arith.constant 0 : index
    %c0_2 = arith.constant 0 : index
    %1 = vector.load %arg3[%c0_1, %c0_2] : memref<8x1xf32, #tpu.memory_space<vmem>>, vector<8x1xf32>
    %2 = vector.broadcast %1 : vector<8x1xf32> to vector<8x32768xf32>
    %3 = arith.mulf %0, %2 : vector<8x32768xf32>
    %c0_3 = arith.constant 0 : index
    %c0_4 = arith.constant 0 : index
    %4 = vector.load %arg4[%c0_3, %c0_4] : memref<8x32768xf32, #tpu.memory_space<vmem>>, vector<8x32768xf32>
    tpu.vector_store %arg4[%c0_3, %c0_4], %3 {strides = array<i32>} : memref<8x32768xf32, #tpu.memory_space<vmem>>, vector<8x32768xf32>,
    return
  }
  func.func @transform_0(%arg0: i32, %arg1: i32) -> (i32, i32) {
    %c0_i32 = arith.constant 0 : i32
    return %arg0, %arg1 : i32, i32
  }
  func.func @transform_1(%arg0: i32, %arg1: i32) -> (i32, i32) {
    %c0_i32 = arith.constant 0 : i32
    %c0_i32_0 = arith.constant 0 : i32
    return %arg0, %c0_i32 : i32, i32
  }
  func.func @transform_2(%arg0: i32, %arg1: i32) -> (i32, i32) {
    %c0_i32 = arith.constant 0 : i32
    return %arg0, %arg1 : i32, i32
  }
}

</mosaic_0001>

<bundles_post_ra>
// kernel: tpu_custom_call.1
= control target key start
LH: loop header
LB: loop body
LE: loop exit
PB: predicated region body
PF: predicated region fallthrough
CT: control target
= control target key end

     0   :  { %7 = vsyncpa [#allocation3], 0  ;;  %s2894_s0 = inlined_call_operand.hbm [shape: f32[16,131072], index: 0, kind: input, shape index: {}, may-alias: {0,2}]   ;;  %s2895_s1 = inlined_call_operand.vmem [shape: f32[16,1], index: 1, kind: input, shape index: {}]   ;;  %s2896_s2 = inlined_call_operand.hbm [shape: f32[16,131072], index: 2, kind: output, shape index: {}, may-alias: {0,2}]  }
   0x1   :  { %9 = vsyncpa [#allocation3 + $0x1], 0 }
   0x2   :  { %10 = vsyncpa [#allocation4], 0 }
   0x3   :  { %12 = vsyncpa [#allocation4 + $0x1], 0  ;;  %s1333_s9 = smov 0   ;;  %s1335_s10 = smov 0  }
   0x4   :  { %s1337_s11 = smov 0   ;;  %s1339_s12 = smov 0  }
   0x5   :  { %s1341_s13 = smov 0   ;;  %s1343_s14 = smov 0  }
   0x6   :  { %s1345_s15 = smov 0   ;;  %s1347_s16 = smov 0  }
   0x7 LB: > { %s1087_s17 = sadd.s32 4294967295, %s1313_s16   ;;  %s1088_s18 = sadd.s32 4294967294, %s1313_s16   ;;  %s1313_s16 = sphi %s1347_s16, %s18_s16   ;;  %s1309_s15 = sphi %s1345_s15, %s2913_s15   ;;  %s1305_s14 = sphi %s1343_s14, %s2912_s14   ;;  %s1301_s13 = sphi %s1341_s13, %s2911_s13   ;;  %s1297_s12 = sphi %s1339_s12, %s2910_s12   ;;  %s1293_s11 = sphi %s1337_s11, %s2909_s11   ;;  %s1289_s10 = sphi %s1335_s10, %s2908_s10   ;;  %s1285_s9 = sphi %s1333_s9, %s2907_s9  }
   0x8   : > { %s27_s19 = sadd.s32 1, %s1305_s14  ;;  %s30_s20 = sadd.s32 1, %s1309_s15 }
   0x9   : > { %p28_p0 = scmp.ge.s32.totalorder %s27_s19, 4  ;;  %s39_s21 = sadd.s32 1, %s1293_s11 }
   0xa   : > { %p46_p1 = scmp.ne.s32.totalorder %s1293_s11, %s1289_s10  ;;  %p47_p2 = scmp.eq.s32.totalorder %s1313_s16, 0 }
   0xb   : > { %s2915_s19 = smov (%p28_p0, %s27_s19), 0  ;;  %s2917_s20 = smov (!%p28_p0, %s30_s20), %s1309_s15 }
   0xc   : > { %s35_s22 = ssub.s32 %s1305_s14, %s2915_s19  ;;  %p1386_p3 = por %p47_p2, %p46_p1 }
   0xd   : > { %p32_p4 = scmp.ge.s32.totalorder %s2917_s20, 2  ;;  %p52_p5 = scmp.ne.s32.totalorder %s1289_s10, %s1285_s9 }
   0xe   : > { %p53_p6 = scmp.eq.s32.totalorder %s1087_s17, 0  ;;  %p104_p7 = scmp.eq.s32.totalorder %s1087_s17, 7 }
   0xf   : > { %s2919_s20 = smov (%p32_p4, %s2917_s20), 0  ;;  %p110_p10 = scmp.eq.s32.totalorder %s1088_s18, 7 }
  0x10   : > { %p1394_p8 = por %p53_p6, %p52_p5  ;;  %p1398_p9 = por %p104_p7, %p46_p1 }
  0x11   : > { %s34_s26 = ssub.s32 %s1309_s15, %s2919_s20  ;;  %p1404_p12 = por %p110_p10, %p52_p5 }
  0x12   : > { %s2900_s25 = scalar_select %p1398_p9, 1, 0 }
  0x13   : > { %s36_s27 = sor.u32 %s35_s22, %s34_s26  ;;  %p1117_p13 = scmp.lt.s32.totalorder %s1313_s16, 8 }
  0x14   : > { %p37_p11 = scmp.eq.s32.totalorder %s36_s27, 0  ;;  %s130_s29 = sand.u32 1, %s1293_s11  }
  0x15   : > { %s2901_s28 = scalar_select %p1404_p12, 1, 0 }
  0x16   : > { %s1411_s30 = scalar_select %p37_p11, %s1293_s11, %s39_s21  }
  0x17   : > { %s1091_s3 = sshll.u32 %s130_s29, 11  ;;  %s1092_s4 = sshll.u32 %s1305_s14, 8 }
  0x18   : > { %s1093_s5 = sshll.u32 %s1309_s15, 10  ;;  %s134_s6 = scalar_lea.vmem [#allocation2], %s1091_s3 }
  0x19   : > { %s144_s7 = sshll.u32 %s134_s6, 4  ;;  %s140_s8 = sadd.s32 %s1093_s5, %s1092_s4  ;;  %s1415_s7 = int_to_ptr.vmem [resolvable:$true] %s144_s7 }
  0x1a   : > { %s1094_s17 = sshll.u32 %s140_s8, 7  ;;  %p1419_p0 = pnand %p1117_p13, %p1386_p3 }
  0x1b   : > { %s1426_s21 = scalar_lea.hbm %s2894_s0, %s1094_s17  ;;  %s131_s27 = scalar_lea.sflag [#allocation3], %s130_s29 }
  0x1c   : > { %s1185_s3 = scalar_lea.hbm %s1426_s21, 32768  ;;  %p1187_p3 = pneg %p1419_p0 }
  0x1d   : > { %p1186_p4 = scmp.ne.s32.totalorder %s1426_s21, %s1185_s3  ;;  %s1190_s5 = scalar_lea.hbm %s2894_s0, 262144 }
  0x1e   : > { %p1191_p7 = scmp.lt.u32.totalorder %s1426_s21, %s2894_s0  ;;  %p1192_p10 = scmp.lt.u32.totalorder %s1190_s5, %s1185_s3 }
  0x1f   : > { %p1188_p5 = pnand %p1187_p3, %p1186_p4  ;;  %p1194_p13 = scmp.lt.u32.totalorder %s1185_s3, %s1426_s21 }
  0x20   : > { %p1193_p11 = por %p1192_p10, %p1191_p7 }
  0x21   : > { %p1189_p6 = pneg %p1188_p5 }
  0x22   : > { %p1195_p1 = por %p1194_p13, %p1193_p11 }
  0x24   : > { %p1196_p2 = pnand %p1195_p1, %p1189_p6 }
  0x26   : > { %1199 = shalt.err (!%p1196_p2)
}
  0x27   : > { %s1200_s29 = scalar_lea.vmem %s1415_s7, 32768  ;;  %s1315_s17 = smov [#allocation2]  }
  0x28   : > { %p1201_p4 = scmp.ne.s32.totalorder %s1415_s7, %s1200_s29  ;;  %s1205_s22 = sshll.u32 %s1315_s17, 4  ;;  %s1206_s22 = int_to_ptr.vmem [resolvable:$false] %s1205_s22 }
  0x29   : > { %s1207_s26 = scalar_lea.vmem %s1206_s22, 65536  ;;  %p1208_p9 = scmp.lt.s32.totalorder %s1415_s7, %s1206_s22 }
  0x2a   : > { %p1203_p5 = pnand %p1201_p4, %p1187_p3  ;;  %p1209_p7 = scmp.lt.s32.totalorder %s1207_s26, %s1200_s29 }
  0x2c   : > { %p1204_p12 = pneg %p1203_p5  ;;  %p1210_p10 = por %p1209_p7, %p1208_p9 }
  0x2e   : > { %p1211_p11 = pnand %p1210_p10, %p1204_p12 }
  0x30   : > { %1214 = shalt.err (!%p1211_p11)
}
  0x31   : > { %1112 = dma.hbm_to_vmem [thread:$0]  (!%p1419_p0), %s1426_s21, 32768, %s1415_s7, %s131_s27  }
  0x32   : > { %p2903_p1 = scmp.lt.s32.totalorder %s1313_s16, 9  ;;  %p2904_p2 = scmp.ge.s32.totalorder %s1313_s16, 1 }
  0x34   : > { %p157_p3 = pnand %p2904_p2, %p2903_p1 }
  0x35   : > { %s1460_s3 = sand.u32 (!%p157_p3), 1, %s1289_s10  }
  0x36   : > { %160 = sbr.rel (%p157_p3) target bundleno = 341 (0x155), region = 28  ;;  %s1096_s23 = sshll.u32 (!%p157_p3), %s1460_s3, 11 }
  0x37   : > { %s163_s4 = scalar_lea.sflag (!%p157_p3), [#allocation3], %s1460_s3  ;;  %s1466_s18 = scalar_lea.vmem (!%p157_p3), [#allocation2], %s1096_s23 }
  0x3d   : > { %1276 = dma.done.wait (%p1394_p8), %s163_s4, 32768  }
  0x3e   : > { %1278 = vsyncadd (%p1394_p8), %s163_s4, 4294934528  ;;  %p192_p9 = scmp.lt.s32.totalorder %s1301_s13, 1  ;;  %v1316_v0 = vmov 0   ;;  %v197_v2 = vld [vmem:[%s1466_s18] sm:$0xff]  ;;  %v198_v3 = vld [vmem:[%s1466_s18 + $0x8] sm:$0xff]  ;;  %s1533_s6 = scalar_lea.vmem [#allocation5], %s1096_s23 }
  0x3f   : > { %1184 = vset.pattern.permute.xlu0 %v1316_v0  ;;  %v199_v4 = vld [vmem:[%s1466_s18 + $0x10] sm:$0xff]  ;;  %v200_v5 = vld [vmem:[%s1466_s18 + $0x18] sm:$0xff]  ;;  %v201_v6 = vld [vmem:[%s1466_s18 + $0x20] sm:$0xff]  ;;  %s1100_s8 = sshll.u32 %s1297_s12, 8  ;;  %s1101_s29 = sshll.u32 %s1301_s13, 10 }
  0x40   : > { %s193_s7 = scalar_select %p192_p9, %s1301_s13, 1  ;;  %v202_v7 = vld [vmem:[%s1466_s18 + $0x28] sm:$0xff]  ;;  %v203_v8 = vld [vmem:[%s1466_s18 + $0x30] sm:$0xff]  ;;  %v204_v9 = vld [vmem:[%s1466_s18 + $0x38] sm:$0xff] }
  0x41   : > { %v205_v10 = vld [vmem:[%s1466_s18 + $0x40] sm:$0xff]  ;;  %v206_v11 = vld [vmem:[%s1466_s18 + $0x48] sm:$0xff]  ;;  %v207_v12 = vld [vmem:[%s1466_s18 + $0x50] sm:$0xff]  ;;  %s2768_s17 = sadd.s32 %s1101_s29, %s1100_s8  ;;  %s988_s13 = sshll.u32 %s1533_s6, 4  ;;  %s2834_s13 = int_to_ptr.vmem [resolvable:$true] %s988_s13 }
  0x42   : > { %s1098_s24 = sshll.u32 %s193_s7, 3  ;;  %v208_v13 = vld [vmem:[%s1466_s18 + $0x58] sm:$0xff]  ;;  %v209_v14 = vld [vmem:[%s1466_s18 + $0x60] sm:$0xff]  ;;  %v210_v15 = vld [vmem:[%s1466_s18 + $0x68] sm:$0xff]  ;;  %s1102_s12 = sshll.u32 %s2768_s17, 7 }
  0x43   : > { %s195_s5 = scalar_lea.vmem %s2895_s1, %s1098_s24  ;;  %v211_v16 = vld [vmem:[%s1466_s18 + $0x70] sm:$0xff]  ;;  %v212_v17 = vld [vmem:[%s1466_s18 + $0x78] sm:$0xff]  ;;  %v213_v19 = vld [vmem:[%s1466_s18 + $0x80] sm:$0xff]  ;;  %s2832_s23 = scalar_lea.hbm %s2896_s2, %s1102_s12 }
  0x44   : > { %v453_v1 = vld [vmem:[%s195_s5] sm:$0xff]  ;;  %v214_v20 = vld [vmem:[%s1466_s18 + $0x88] sm:$0xff]  ;;  %v215_v21 = vld [vmem:[%s1466_s18 + $0x90] sm:$0xff]  ;;  %s972_s4 = scalar_lea.sflag [#allocation4], %s1460_s3  ;;  %p2905_p12 = scmp.ne.s32.totalorder %s2900_s25, 0 }
  0x45   : > { %456 = vperm.xlu0 %1184, %v453_v1   ;;  %v216_v22 = vld [vmem:[%s1466_s18 + $0x98] sm:$0xff]  ;;  %v217_v23 = vld [vmem:[%s1466_s18 + $0xa0] sm:$0xff]  ;;  %v218_v24 = vld [vmem:[%s1466_s18 + $0xa8] sm:$0xff]  ;;  %s1317_s7 = smov [#allocation5]  }
  0x46   : > { %v219_v25 = vld [vmem:[%s1466_s18 + $0xb0] sm:$0xff]  ;;  %v220_v26 = vld [vmem:[%s1466_s18 + $0xb8] sm:$0xff]  ;;  %v221_v31 = vld [vmem:[%s1466_s18 + $0xc0] sm:$0xff]  ;;  %s1219_s24 = sshll.u32 %s1317_s7, 4  ;;  %s1220_s24 = int_to_ptr.vmem [resolvable:$false] %s1219_s24 }
  0x47   : > { %v222_v32 = vld [vmem:[%s1466_s18 + $0xc8] sm:$0xff]  ;;  %v223_v33 = vld [vmem:[%s1466_s18 + $0xd0] sm:$0xff]  ;;  %v224_v34 = vld [vmem:[%s1466_s18 + $0xd8] sm:$0xff]  ;;  %s1221_s21 = scalar_lea.vmem %s1220_s24, 65536  ;;  %p1222_p13 = scmp.lt.s32.totalorder %s2834_s13, %s1220_s24 }
  0x48   : > { %v1516_v39 = vld [vmem:[%s1466_s18 + $0xe0] sm:$0xff]  ;;  %v1519_v40 = vld [vmem:[%s1466_s18 + $0xe8] sm:$0xff]  ;;  %v1522_v41 = vld [vmem:[%s1466_s18 + $0xf0] sm:$0xff] }
  0x49   : > { %v1525_v42 = vld [vmem:[%s1466_s18 + $0xf8] sm:$0xff]  ;;  %v1540_v47 = vld [vmem:[%s1466_s18 + $0x100] sm:$0xff]  ;;  %v1543_v48 = vld [vmem:[%s1466_s18 + $0x108] sm:$0xff] }
  0x4a   : > { %v1546_v49 = vld [vmem:[%s1466_s18 + $0x110] sm:$0xff]  ;;  %v1549_v50 = vld [vmem:[%s1466_s18 + $0x118] sm:$0xff]  ;;  %v1560_v55 = vld [vmem:[%s1466_s18 + $0x120] sm:$0xff] }
  0x4b   : > { %v1563_v56 = vld [vmem:[%s1466_s18 + $0x128] sm:$0xff]  ;;  %v1566_v57 = vld [vmem:[%s1466_s18 + $0x130] sm:$0xff]  ;;  %v1569_v58 = vld [vmem:[%s1466_s18 + $0x138] sm:$0xff] }
  0x4c   : > { %v1580_v63 = vld [vmem:[%s1466_s18 + $0x140] sm:$0xff]  ;;  %v1583_v0 = vld [vmem:[%s1466_s18 + $0x148] sm:$0xff]  ;;  %v1586_v1 = vld [vmem:[%s1466_s18 + $0x150] sm:$0xff] }
  0xc4   : > { %v1493_v18 = vpop.permute.xlu0 %456 }
  0xc5   : > { %v459_v27 = vmul.f32 %v1493_v18, %v197_v2  ;;  %v460_v28 = vmul.f32 %v1493_v18, %v198_v3  ;;  %v461_v29 = vmul.f32 %v1493_v18, %v199_v4  ;;  %v462_v30 = vmul.f32 %v1493_v18, %v200_v5  ;;  %v1589_v2 = vld [vmem:[%s1466_s18 + $0x158] sm:$0xff] }
  0xc6   : > { %v463_v35 = vmul.f32 %v1493_v18, %v201_v6  ;;  %v464_v36 = vmul.f32 %v1493_v18, %v202_v7  ;;  %v465_v37 = vmul.f32 %v1493_v18, %v203_v8  ;;  %v466_v38 = vmul.f32 %v1493_v18, %v204_v9  ;;  %v1600_v7 = vld [vmem:[%s1466_s18 + $0x160] sm:$0xff]  ;;  %v1603_v8 = vld [vmem:[%s1466_s18 + $0x168] sm:$0xff]  ;;  %v1606_v9 = vld [vmem:[%s1466_s18 + $0x170] sm:$0xff] }
  0xc7   : > { %v467_v43 = vmul.f32 %v1493_v18, %v205_v10  ;;  %v468_v44 = vmul.f32 %v1493_v18, %v206_v11  ;;  %v469_v45 = vmul.f32 %v1493_v18, %v207_v12  ;;  %v470_v46 = vmul.f32 %v1493_v18, %v208_v13  ;;  %715 = vst [vmem:[%s1533_s6] sm:$0xff] %v459_v27  ;;  %v1609_v10 = vld [vmem:[%s1466_s18 + $0x178] sm:$0xff] }
  0xc8   : > { %716 = vst [vmem:[%s1533_s6 + $0x8] sm:$0xff] %v460_v28  ;;  %717 = vst [vmem:[%s1533_s6 + $0x10] sm:$0xff] %v461_v29  ;;  %v471_v51 = vmul.f32 %v1493_v18, %v209_v14  ;;  %v472_v52 = vmul.f32 %v1493_v18, %v210_v15  ;;  %v473_v53 = vmul.f32 %v1493_v18, %v211_v16  ;;  %v1620_v15 = vld [vmem:[%s1466_s18 + $0x180] sm:$0xff]  ;;  %v1623_v16 = vld [vmem:[%s1466_s18 + $0x188] sm:$0xff] }
  0xc9   : > { %718 = vst [vmem:[%s1533_s6 + $0x18] sm:$0xff] %v462_v30  ;;  %v474_v54 = vmul.f32 %v1493_v18, %v212_v17  ;;  %719 = vst [vmem:[%s1533_s6 + $0x20] sm:$0xff] %v463_v35  ;;  %v475_v59 = vmul.f32 %v1493_v18, %v213_v19  ;;  %v476_v60 = vmul.f32 %v1493_v18, %v214_v20  ;;  %v1626_v17 = vld [vmem:[%s1466_s18 + $0x190] sm:$0xff]  ;;  %v1629_v19 = vld [vmem:[%s1466_s18 + $0x198] sm:$0xff] }
  0xca   : > { %720 = vst [vmem:[%s1533_s6 + $0x28] sm:$0xff] %v464_v36  ;;  %721 = vst [vmem:[%s1533_s6 + $0x30] sm:$0xff] %v465_v37  ;;  %v477_v61 = vmul.f32 %v1493_v18, %v215_v21  ;;  %v478_v62 = vmul.f32 %v1493_v18, %v216_v22  ;;  %v479_v3 = vmul.f32 %v1493_v18, %v217_v23  ;;  %v1653_v27 = vld [vmem:[%s1466_s18 + $0x1b8] sm:$0xff] }
  0xcb   : > { %722 = vst [vmem:[%s1533_s6 + $0x38] sm:$0xff] %v466_v38  ;;  %723 = vst [vmem:[%s1533_s6 + $0x40] sm:$0xff] %v467_v43  ;;  %v480_v4 = vmul.f32 %v1493_v18, %v218_v24  ;;  %v481_v5 = vmul.f32 %v1493_v18, %v219_v25  ;;  %v482_v6 = vmul.f32 %v1493_v18, %v220_v26  ;;  %v1644_v24 = vld [vmem:[%s1466_s18 + $0x1a0] sm:$0xff]  ;;  %v1647_v25 = vld [vmem:[%s1466_s18 + $0x1a8] sm:$0xff] }
  0xcc   : > { %724 = vst [vmem:[%s1533_s6 + $0x48] sm:$0xff] %v468_v44  ;;  %725 = vst [vmem:[%s1533_s6 + $0x50] sm:$0xff] %v469_v45  ;;  %v483_v11 = vmul.f32 %v1493_v18, %v221_v31  ;;  %v484_v12 = vmul.f32 %v1493_v18, %v222_v32  ;;  %v485_v13 = vmul.f32 %v1493_v18, %v223_v33  ;;  %v1650_v26 = vld [vmem:[%s1466_s18 + $0x1b0] sm:$0xff]  ;;  %v1668_v32 = vld [vmem:[%s1466_s18 + $0x1c0] sm:$0xff] }
  0xcd   : > { %726 = vst [vmem:[%s1533_s6 + $0x58] sm:$0xff] %v470_v46  ;;  %727 = vst [vmem:[%s1533_s6 + $0x60] sm:$0xff] %v471_v51  ;;  %v486_v14 = vmul.f32 %v1493_v18, %v224_v34  ;;  %v487_v20 = vmul.f32 %v1493_v18, %v1516_v39  ;;  %v488_v21 = vmul.f32 %v1493_v18, %v1519_v40  ;;  %v1671_v33 = vld [vmem:[%s1466_s18 + $0x1c8] sm:$0xff]  ;;  %v1674_v34 = vld [vmem:[%s1466_s18 + $0x1d0] sm:$0xff] }
  0xce   : > { %728 = vst [vmem:[%s1533_s6 + $0x68] sm:$0xff] %v472_v52  ;;  %729 = vst [vmem:[%s1533_s6 + $0x70] sm:$0xff] %v473_v53  ;;  %v489_v22 = vmul.f32 %v1493_v18, %v1522_v41  ;;  %v490_v23 = vmul.f32 %v1493_v18, %v1525_v42  ;;  %v491_v28 = vmul.f32 %v1493_v18, %v1540_v47  ;;  %v1677_v35 = vld [vmem:[%s1466_s18 + $0x1d8] sm:$0xff]  ;;  %v1692_v40 = vld [vmem:[%s1466_s18 + $0x1e0] sm:$0xff] }
  0xcf   : > { %730 = vst [vmem:[%s1533_s6 + $0x78] sm:$0xff] %v474_v54  ;;  %731 = vst [vmem:[%s1533_s6 + $0x80] sm:$0xff] %v475_v59  ;;  %v492_v29 = vmul.f32 %v1493_v18, %v1543_v48  ;;  %v493_v30 = vmul.f32 %v1493_v18, %v1546_v49  ;;  %v494_v31 = vmul.f32 %v1493_v18, %v1549_v50  ;;  %v1695_v41 = vld [vmem:[%s1466_s18 + $0x1e8] sm:$0xff]  ;;  %v1698_v42 = vld [vmem:[%s1466_s18 + $0x1f0] sm:$0xff] }
  0xd0   : > { %732 = vst [vmem:[%s1533_s6 + $0x88] sm:$0xff] %v476_v60  ;;  %733 = vst [vmem:[%s1533_s6 + $0x90] sm:$0xff] %v477_v61  ;;  %v495_v36 = vmul.f32 %v1493_v18, %v1560_v55  ;;  %v496_v37 = vmul.f32 %v1493_v18, %v1563_v56  ;;  %v497_v38 = vmul.f32 %v1493_v18, %v1566_v57  ;;  %v1701_v43 = vld [vmem:[%s1466_s18 + $0x1f8] sm:$0xff]  ;;  %v1716_v48 = vld [vmem:[%s1466_s18 + $0x200] sm:$0xff] }
  0xd1   : > { %734 = vst [vmem:[%s1533_s6 + $0x98] sm:$0xff] %v478_v62  ;;  %735 = vst [vmem:[%s1533_s6 + $0xa0] sm:$0xff] %v479_v3  ;;  %v498_v39 = vmul.f32 %v1493_v18, %v1569_v58  ;;  %v499_v44 = vmul.f32 %v1493_v18, %v1580_v63  ;;  %v500_v45 = vmul.f32 %v1493_v18, %v1583_v0  ;;  %v1719_v49 = vld [vmem:[%s1466_s18 + $0x208] sm:$0xff]  ;;  %v1722_v50 = vld [vmem:[%s1466_s18 + $0x210] sm:$0xff] }
  0xd2   : > { %736 = vst [vmem:[%s1533_s6 + $0xa8] sm:$0xff] %v480_v4  ;;  %737 = vst [vmem:[%s1533_s6 + $0xb0] sm:$0xff] %v481_v5  ;;  %v501_v46 = vmul.f32 %v1493_v18, %v1586_v1  ;;  %v502_v47 = vmul.f32 %v1493_v18, %v1589_v2  ;;  %v1725_v51 = vld [vmem:[%s1466_s18 + $0x218] sm:$0xff]  ;;  %v503_v52 = vmul.f32 %v1493_v18, %v1600_v7  ;;  %v1740_v56 = vld [vmem:[%s1466_s18 + $0x220] sm:$0xff] }
  0xd3   : > { %738 = vst [vmem:[%s1533_s6 + $0xb8] sm:$0xff] %v482_v6  ;;  %739 = vst [vmem:[%s1533_s6 + $0xc0] sm:$0xff] %v483_v11  ;;  %v504_v53 = vmul.f32 %v1493_v18, %v1603_v8  ;;  %v505_v54 = vmul.f32 %v1493_v18, %v1606_v9  ;;  %v506_v55 = vmul.f32 %v1493_v18, %v1609_v10  ;;  %v1743_v57 = vld [vmem:[%s1466_s18 + $0x228] sm:$0xff]  ;;  %v1746_v58 = vld [vmem:[%s1466_s18 + $0x230] sm:$0xff] }
  0xd4   : > { %740 = vst [vmem:[%s1533_s6 + $0xc8] sm:$0xff] %v484_v12  ;;  %741 = vst [vmem:[%s1533_s6 + $0xd0] sm:$0xff] %v485_v13  ;;  %v1749_v59 = vld [vmem:[%s1466_s18 + $0x238] sm:$0xff]  ;;  %v507_v60 = vmul.f32 %v1493_v18, %v1620_v15  ;;  %v508_v61 = vmul.f32 %v1493_v18, %v1623_v16  ;;  %v509_v62 = vmul.f32 %v1493_v18, %v1626_v17  ;;  %v1764_v0 = vld [vmem:[%s1466_s18 + $0x240] sm:$0xff] }
  0xd5   : > { %742 = vst [vmem:[%s1533_s6 + $0xd8] sm:$0xff] %v486_v14  ;;  %743 = vst [vmem:[%s1533_s6 + $0xe0] sm:$0xff] %v487_v20  ;;  %v510_v63 = vmul.f32 %v1493_v18, %v1629_v19  ;;  %v1767_v1 = vld [vmem:[%s1466_s18 + $0x248] sm:$0xff]  ;;  %v1770_v2 = vld [vmem:[%s1466_s18 + $0x250] sm:$0xff]  ;;  %v511_v4 = vmul.f32 %v1493_v18, %v1644_v24  ;;  %v512_v5 = vmul.f32 %v1493_v18, %v1647_v25 }
  0xd6   : > { %744 = vst [vmem:[%s1533_s6 + $0xe8] sm:$0xff] %v488_v21  ;;  %745 = vst [vmem:[%s1533_s6 + $0xf0] sm:$0xff] %v489_v22  ;;  %v1773_v3 = vld [vmem:[%s1466_s18 + $0x258] sm:$0xff]  ;;  %v513_v6 = vmul.f32 %v1493_v18, %v1650_v26  ;;  %v514_v7 = vmul.f32 %v1493_v18, %v1653_v27  ;;  %v1788_v8 = vld [vmem:[%s1466_s18 + $0x260] sm:$0xff]  ;;  %v515_v12 = vmul.f32 %v1493_v18, %v1668_v32 }
  0xd7   : > { %746 = vst [vmem:[%s1533_s6 + $0xf8] sm:$0xff] %v490_v23  ;;  %747 = vst [vmem:[%s1533_s6 + $0x100] sm:$0xff] %v491_v28  ;;  %v1791_v9 = vld [vmem:[%s1466_s18 + $0x268] sm:$0xff]  ;;  %v1794_v10 = vld [vmem:[%s1466_s18 + $0x270] sm:$0xff]  ;;  %v516_v13 = vmul.f32 %v1493_v18, %v1671_v33  ;;  %v517_v14 = vmul.f32 %v1493_v18, %v1674_v34  ;;  %v518_v15 = vmul.f32 %v1493_v18, %v1677_v35 }
  0xd8   : > { %748 = vst [vmem:[%s1533_s6 + $0x108] sm:$0xff] %v492_v29  ;;  %749 = vst [vmem:[%s1533_s6 + $0x110] sm:$0xff] %v493_v30  ;;  %v1797_v11 = vld [vmem:[%s1466_s18 + $0x278] sm:$0xff]  ;;  %v1812_v16 = vld [vmem:[%s1466_s18 + $0x280] sm:$0xff]  ;;  %v519_v21 = vmul.f32 %v1493_v18, %v1692_v40  ;;  %v520_v22 = vmul.f32 %v1493_v18, %v1695_v41  ;;  %v521_v23 = vmul.f32 %v1493_v18, %v1698_v42 }
  0xd9   : > { %750 = vst [vmem:[%s1533_s6 + $0x118] sm:$0xff] %v494_v31  ;;  %751 = vst [vmem:[%s1533_s6 + $0x120] sm:$0xff] %v495_v36  ;;  %v1815_v17 = vld [vmem:[%s1466_s18 + $0x288] sm:$0xff]  ;;  %v1818_v19 = vld [vmem:[%s1466_s18 + $0x290] sm:$0xff]  ;;  %v522_v24 = vmul.f32 %v1493_v18, %v1701_v43  ;;  %v523_v29 = vmul.f32 %v1493_v18, %v1716_v48  ;;  %v524_v30 = vmul.f32 %v1493_v18, %v1719_v49 }
  0xda   : > { %752 = vst [vmem:[%s1533_s6 + $0x128] sm:$0xff] %v496_v37  ;;  %753 = vst [vmem:[%s1533_s6 + $0x130] sm:$0xff] %v497_v38  ;;  %v1821_v20 = vld [vmem:[%s1466_s18 + $0x298] sm:$0xff]  ;;  %v1836_v25 = vld [vmem:[%s1466_s18 + $0x2a0] sm:$0xff]  ;;  %v525_v31 = vmul.f32 %v1493_v18, %v1722_v50  ;;  %v526_v32 = vmul.f32 %v1493_v18, %v1725_v51  ;;  %v527_v37 = vmul.f32 %v1493_v18, %v1740_v56 }
  0xdb   : > { %754 = vst [vmem:[%s1533_s6 + $0x138] sm:$0xff] %v498_v39  ;;  %755 = vst [vmem:[%s1533_s6 + $0x140] sm:$0xff] %v499_v44  ;;  %v1839_v26 = vld [vmem:[%s1466_s18 + $0x2a8] sm:$0xff]  ;;  %v1842_v27 = vld [vmem:[%s1466_s18 + $0x2b0] sm:$0xff]  ;;  %v528_v38 = vmul.f32 %v1493_v18, %v1743_v57  ;;  %v529_v39 = vmul.f32 %v1493_v18, %v1746_v58  ;;  %v530_v40 = vmul.f32 %v1493_v18, %v1749_v59 }
  0xdc   : > { %756 = vst [vmem:[%s1533_s6 + $0x148] sm:$0xff] %v500_v45  ;;  %757 = vst [vmem:[%s1533_s6 + $0x150] sm:$0xff] %v501_v46  ;;  %v1845_v28 = vld [vmem:[%s1466_s18 + $0x2b8] sm:$0xff]  ;;  %v1860_v33 = vld [vmem:[%s1466_s18 + $0x2c0] sm:$0xff]  ;;  %v531_v45 = vmul.f32 %v1493_v18, %v1764_v0  ;;  %v532_v46 = vmul.f32 %v1493_v18, %v1767_v1  ;;  %v534_v48 = vmul.f32 %v1493_v18, %v1773_v3 }
  0xdd   : > { %758 = vst [vmem:[%s1533_s6 + $0x158] sm:$0xff] %v502_v47  ;;  %759 = vst [vmem:[%s1533_s6 + $0x160] sm:$0xff] %v503_v52  ;;  %v1863_v34 = vld [vmem:[%s1466_s18 + $0x2c8] sm:$0xff]  ;;  %v1866_v35 = vld [vmem:[%s1466_s18 + $0x2d0] sm:$0xff]  ;;  %v533_v47 = vmul.f32 %v1493_v18, %v1770_v2  ;;  %v538_v56 = vmul.f32 %v1493_v18, %v1797_v11  ;;  %v542_v0 = vmul.f32 %v1493_v18, %v1821_v20 }
  0xde   : > { %760 = vst [vmem:[%s1533_s6 + $0x168] sm:$0xff] %v504_v53  ;;  %761 = vst [vmem:[%s1533_s6 + $0x170] sm:$0xff] %v505_v54  ;;  %v1869_v36 = vld [vmem:[%s1466_s18 + $0x2d8] sm:$0xff]  ;;  %v1884_v41 = vld [vmem:[%s1466_s18 + $0x2e0] sm:$0xff]  ;;  %v535_v53 = vmul.f32 %v1493_v18, %v1788_v8  ;;  %v536_v54 = vmul.f32 %v1493_v18, %v1791_v9  ;;  %v546_v8 = vmul.f32 %v1493_v18, %v1845_v28 }
  0xdf   : > { %762 = vst [vmem:[%s1533_s6 + $0x178] sm:$0xff] %v506_v55  ;;  %763 = vst [vmem:[%s1533_s6 + $0x180] sm:$0xff] %v507_v60  ;;  %v1887_v42 = vld [vmem:[%s1466_s18 + $0x2e8] sm:$0xff]  ;;  %v1890_v43 = vld [vmem:[%s1466_s18 + $0x2f0] sm:$0xff]  ;;  %v537_v55 = vmul.f32 %v1493_v18, %v1794_v10 }
  0xe0   : > { %764 = vst [vmem:[%s1533_s6 + $0x188] sm:$0xff] %v508_v61  ;;  %765 = vst [vmem:[%s1533_s6 + $0x190] sm:$0xff] %v509_v62  ;;  %v1893_v44 = vld [vmem:[%s1466_s18 + $0x2f8] sm:$0xff]  ;;  %v1908_v49 = vld [vmem:[%s1466_s18 + $0x300] sm:$0xff]  ;;  %v539_v61 = vmul.f32 %v1493_v18, %v1812_v16  ;;  %v540_v62 = vmul.f32 %v1493_v18, %v1815_v17  ;;  %v550_v16 = vmul.f32 %v1493_v18, %v1869_v36 }
  0xe1   : > { %766 = vst [vmem:[%s1533_s6 + $0x198] sm:$0xff] %v510_v63  ;;  %767 = vst [vmem:[%s1533_s6 + $0x1a0] sm:$0xff] %v511_v4  ;;  %v1911_v50 = vld [vmem:[%s1466_s18 + $0x308] sm:$0xff]  ;;  %v1914_v51 = vld [vmem:[%s1466_s18 + $0x310] sm:$0xff]  ;;  %v541_v63 = vmul.f32 %v1493_v18, %v1818_v19 }
  0xe2   : > { %768 = vst [vmem:[%s1533_s6 + $0x1a8] sm:$0xff] %v512_v5  ;;  %769 = vst [vmem:[%s1533_s6 + $0x1b0] sm:$0xff] %v513_v6  ;;  %v1917_v52 = vld [vmem:[%s1466_s18 + $0x318] sm:$0xff]  ;;  %v1932_v57 = vld [vmem:[%s1466_s18 + $0x320] sm:$0xff]  ;;  %v543_v5 = vmul.f32 %v1493_v18, %v1836_v25  ;;  %v544_v6 = vmul.f32 %v1493_v18, %v1839_v26  ;;  %v554_v25 = vmul.f32 %v1493_v18, %v1893_v44 }
  0xe3   : > { %770 = vst [vmem:[%s1533_s6 + $0x1b8] sm:$0xff] %v514_v7  ;;  %771 = vst [vmem:[%s1533_s6 + $0x1c0] sm:$0xff] %v515_v12  ;;  %v1935_v58 = vld [vmem:[%s1466_s18 + $0x328] sm:$0xff]  ;;  %v1938_v59 = vld [vmem:[%s1466_s18 + $0x330] sm:$0xff]  ;;  %v545_v7 = vmul.f32 %v1493_v18, %v1842_v27 }
  0xe4   : > { %772 = vst [vmem:[%s1533_s6 + $0x1c8] sm:$0xff] %v516_v13  ;;  %773 = vst [vmem:[%s1533_s6 + $0x1d0] sm:$0xff] %v517_v14  ;;  %v1941_v60 = vld [vmem:[%s1466_s18 + $0x338] sm:$0xff]  ;;  %v1956_v1 = vld [vmem:[%s1466_s18 + $0x340] sm:$0xff]  ;;  %v547_v13 = vmul.f32 %v1493_v18, %v1860_v33  ;;  %v548_v14 = vmul.f32 %v1493_v18, %v1863_v34  ;;  %v558_v33 = vmul.f32 %v1493_v18, %v1917_v52 }
  0xe5   : > { %774 = vst [vmem:[%s1533_s6 + $0x1d8] sm:$0xff] %v518_v15  ;;  %775 = vst [vmem:[%s1533_s6 + $0x1e0] sm:$0xff] %v519_v21  ;;  %v1959_v2 = vld [vmem:[%s1466_s18 + $0x348] sm:$0xff]  ;;  %v1962_v3 = vld [vmem:[%s1466_s18 + $0x350] sm:$0xff]  ;;  %v549_v15 = vmul.f32 %v1493_v18, %v1866_v35 }
  0xe6   : > { %776 = vst [vmem:[%s1533_s6 + $0x1e8] sm:$0xff] %v520_v22  ;;  %777 = vst [vmem:[%s1533_s6 + $0x1f0] sm:$0xff] %v521_v23  ;;  %v1965_v4 = vld [vmem:[%s1466_s18 + $0x358] sm:$0xff]  ;;  %v1980_v9 = vld [vmem:[%s1466_s18 + $0x360] sm:$0xff]  ;;  %v551_v22 = vmul.f32 %v1493_v18, %v1884_v41  ;;  %v552_v23 = vmul.f32 %v1493_v18, %v1887_v42  ;;  %v562_v41 = vmul.f32 %v1493_v18, %v1941_v60 }
  0xe7   : > { %778 = vst [vmem:[%s1533_s6 + $0x1f8] sm:$0xff] %v522_v24  ;;  %779 = vst [vmem:[%s1533_s6 + $0x200] sm:$0xff] %v523_v29  ;;  %v1983_v10 = vld [vmem:[%s1466_s18 + $0x368] sm:$0xff]  ;;  %v1986_v11 = vld [vmem:[%s1466_s18 + $0x370] sm:$0xff]  ;;  %v553_v24 = vmul.f32 %v1493_v18, %v1890_v43 }
  0xe8   : > { %780 = vst [vmem:[%s1533_s6 + $0x208] sm:$0xff] %v524_v30  ;;  %781 = vst [vmem:[%s1533_s6 + $0x210] sm:$0xff] %v525_v31  ;;  %v1989_v12 = vld [vmem:[%s1466_s18 + $0x378] sm:$0xff]  ;;  %v2004_v17 = vld [vmem:[%s1466_s18 + $0x380] sm:$0xff]  ;;  %v555_v30 = vmul.f32 %v1493_v18, %v1908_v49  ;;  %v556_v31 = vmul.f32 %v1493_v18, %v1911_v50  ;;  %v566_v49 = vmul.f32 %v1493_v18, %v1965_v4 }
  0xe9   : > { %782 = vst [vmem:[%s1533_s6 + $0x218] sm:$0xff] %v526_v32  ;;  %783 = vst [vmem:[%s1533_s6 + $0x220] sm:$0xff] %v527_v37  ;;  %v2007_v19 = vld [vmem:[%s1466_s18 + $0x388] sm:$0xff]  ;;  %v2010_v20 = vld [vmem:[%s1466_s18 + $0x390] sm:$0xff]  ;;  %v557_v32 = vmul.f32 %v1493_v18, %v1914_v51 }
  0xea   : > { %784 = vst [vmem:[%s1533_s6 + $0x228] sm:$0xff] %v528_v38  ;;  %785 = vst [vmem:[%s1533_s6 + $0x230] sm:$0xff] %v529_v39  ;;  %v2013_v21 = vld [vmem:[%s1466_s18 + $0x398] sm:$0xff]  ;;  %v2028_v26 = vld [vmem:[%s1466_s18 + $0x3a0] sm:$0xff]  ;;  %v559_v38 = vmul.f32 %v1493_v18, %v1932_v57  ;;  %v560_v39 = vmul.f32 %v1493_v18, %v1935_v58  ;;  %v570_v57 = vmul.f32 %v1493_v18, %v1989_v12 }
  0xeb   : > { %786 = vst [vmem:[%s1533_s6 + $0x238] sm:$0xff] %v530_v40  ;;  %787 = vst [vmem:[%s1533_s6 + $0x240] sm:$0xff] %v531_v45  ;;  %v2031_v27 = vld [vmem:[%s1466_s18 + $0x3a8] sm:$0xff]  ;;  %v2034_v28 = vld [vmem:[%s1466_s18 + $0x3b0] sm:$0xff]  ;;  %v561_v40 = vmul.f32 %v1493_v18, %v1938_v59 }
  0xec   : > { %788 = vst [vmem:[%s1533_s6 + $0x248] sm:$0xff] %v532_v46  ;;  %789 = vst [vmem:[%s1533_s6 + $0x250] sm:$0xff] %v533_v47  ;;  %v2037_v29 = vld [vmem:[%s1466_s18 + $0x3b8] sm:$0xff]  ;;  %v2052_v34 = vld [vmem:[%s1466_s18 + $0x3c0] sm:$0xff]  ;;  %v563_v46 = vmul.f32 %v1493_v18, %v1956_v1  ;;  %v564_v47 = vmul.f32 %v1493_v18, %v1959_v2  ;;  %v574_v1 = vmul.f32 %v1493_v18, %v2013_v21 }
  0xed   : > { %790 = vst [vmem:[%s1533_s6 + $0x258] sm:$0xff] %v534_v48  ;;  %791 = vst [vmem:[%s1533_s6 + $0x260] sm:$0xff] %v535_v53  ;;  %v2055_v35 = vld [vmem:[%s1466_s18 + $0x3c8] sm:$0xff]  ;;  %v2058_v36 = vld [vmem:[%s1466_s18 + $0x3d0] sm:$0xff]  ;;  %v565_v48 = vmul.f32 %v1493_v18, %v1962_v3 }
  0xee   : > { %792 = vst [vmem:[%s1533_s6 + $0x268] sm:$0xff] %v536_v54  ;;  %793 = vst [vmem:[%s1533_s6 + $0x270] sm:$0xff] %v537_v55  ;;  %v2061_v37 = vld [vmem:[%s1466_s18 + $0x3d8] sm:$0xff]  ;;  %v2076_v42 = vld [vmem:[%s1466_s18 + $0x3e0] sm:$0xff]  ;;  %v567_v54 = vmul.f32 %v1493_v18, %v1980_v9  ;;  %v568_v55 = vmul.f32 %v1493_v18, %v1983_v10  ;;  %v578_v9 = vmul.f32 %v1493_v18, %v2037_v29 }
  0xef   : > { %794 = vst [vmem:[%s1533_s6 + $0x278] sm:$0xff] %v538_v56  ;;  %795 = vst [vmem:[%s1533_s6 + $0x280] sm:$0xff] %v539_v61  ;;  %v2079_v43 = vld [vmem:[%s1466_s18 + $0x3e8] sm:$0xff]  ;;  %v2082_v44 = vld [vmem:[%s1466_s18 + $0x3f0] sm:$0xff]  ;;  %v569_v56 = vmul.f32 %v1493_v18, %v1986_v11 }
  0xf0   : > { %796 = vst [vmem:[%s1533_s6 + $0x288] sm:$0xff] %v540_v62  ;;  %797 = vst [vmem:[%s1533_s6 + $0x290] sm:$0xff] %v541_v63  ;;  %v2085_v45 = vld [vmem:[%s1466_s18 + $0x3f8] sm:$0xff]  ;;  %v2100_v50 = vld [vmem:[%s1466_s18 + $0x400] sm:$0xff]  ;;  %v571_v62 = vmul.f32 %v1493_v18, %v2004_v17  ;;  %v572_v63 = vmul.f32 %v1493_v18, %v2007_v19  ;;  %v582_v17 = vmul.f32 %v1493_v18, %v2061_v37 }
  0xf1   : > { %798 = vst [vmem:[%s1533_s6 + $0x298] sm:$0xff] %v542_v0  ;;  %799 = vst [vmem:[%s1533_s6 + $0x2a0] sm:$0xff] %v543_v5  ;;  %v2103_v51 = vld [vmem:[%s1466_s18 + $0x408] sm:$0xff]  ;;  %v2106_v52 = vld [vmem:[%s1466_s18 + $0x410] sm:$0xff]  ;;  %v573_v0 = vmul.f32 %v1493_v18, %v2010_v20 }
  0xf2   : > { %800 = vst [vmem:[%s1533_s6 + $0x2a8] sm:$0xff] %v544_v6  ;;  %801 = vst [vmem:[%s1533_s6 + $0x2b0] sm:$0xff] %v545_v7  ;;  %v2109_v53 = vld [vmem:[%s1466_s18 + $0x418] sm:$0xff]  ;;  %v2124_v58 = vld [vmem:[%s1466_s18 + $0x420] sm:$0xff]  ;;  %v575_v6 = vmul.f32 %v1493_v18, %v2028_v26  ;;  %v576_v7 = vmul.f32 %v1493_v18, %v2031_v27  ;;  %v586_v26 = vmul.f32 %v1493_v18, %v2085_v45 }
  0xf3   : > { %802 = vst [vmem:[%s1533_s6 + $0x2b8] sm:$0xff] %v546_v8  ;;  %803 = vst [vmem:[%s1533_s6 + $0x2c0] sm:$0xff] %v547_v13  ;;  %v2127_v59 = vld [vmem:[%s1466_s18 + $0x428] sm:$0xff]  ;;  %v2130_v60 = vld [vmem:[%s1466_s18 + $0x430] sm:$0xff]  ;;  %v577_v8 = vmul.f32 %v1493_v18, %v2034_v28 }
  0xf4   : > { %804 = vst [vmem:[%s1533_s6 + $0x2c8] sm:$0xff] %v548_v14  ;;  %805 = vst [vmem:[%s1533_s6 + $0x2d0] sm:$0xff] %v549_v15  ;;  %v2133_v61 = vld [vmem:[%s1466_s18 + $0x438] sm:$0xff]  ;;  %v2148_v2 = vld [vmem:[%s1466_s18 + $0x440] sm:$0xff]  ;;  %v579_v14 = vmul.f32 %v1493_v18, %v2052_v34  ;;  %v580_v15 = vmul.f32 %v1493_v18, %v2055_v35  ;;  %v590_v34 = vmul.f32 %v1493_v18, %v2109_v53 }
  0xf5   : > { %806 = vst [vmem:[%s1533_s6 + $0x2d8] sm:$0xff] %v550_v16  ;;  %807 = vst [vmem:[%s1533_s6 + $0x2e0] sm:$0xff] %v551_v22  ;;  %v2151_v3 = vld [vmem:[%s1466_s18 + $0x448] sm:$0xff]  ;;  %v2154_v4 = vld [vmem:[%s1466_s18 + $0x450] sm:$0xff]  ;;  %v581_v16 = vmul.f32 %v1493_v18, %v2058_v36 }
  0xf6   : > { %808 = vst [vmem:[%s1533_s6 + $0x2e8] sm:$0xff] %v552_v23  ;;  %809 = vst [vmem:[%s1533_s6 + $0x2f0] sm:$0xff] %v553_v24  ;;  %v2157_v5 = vld [vmem:[%s1466_s18 + $0x458] sm:$0xff]  ;;  %v2172_v10 = vld [vmem:[%s1466_s18 + $0x460] sm:$0xff]  ;;  %v583_v23 = vmul.f32 %v1493_v18, %v2076_v42  ;;  %v584_v24 = vmul.f32 %v1493_v18, %v2079_v43  ;;  %v594_v42 = vmul.f32 %v1493_v18, %v2133_v61 }
  0xf7   : > { %810 = vst [vmem:[%s1533_s6 + $0x2f8] sm:$0xff] %v554_v25  ;;  %811 = vst [vmem:[%s1533_s6 + $0x300] sm:$0xff] %v555_v30  ;;  %v2175_v11 = vld [vmem:[%s1466_s18 + $0x468] sm:$0xff]  ;;  %v2178_v12 = vld [vmem:[%s1466_s18 + $0x470] sm:$0xff]  ;;  %v585_v25 = vmul.f32 %v1493_v18, %v2082_v44 }
  0xf8   : > { %812 = vst [vmem:[%s1533_s6 + $0x308] sm:$0xff] %v556_v31  ;;  %813 = vst [vmem:[%s1533_s6 + $0x310] sm:$0xff] %v557_v32  ;;  %v2181_v13 = vld [vmem:[%s1466_s18 + $0x478] sm:$0xff]  ;;  %v2196_v19 = vld [vmem:[%s1466_s18 + $0x480] sm:$0xff]  ;;  %v587_v31 = vmul.f32 %v1493_v18, %v2100_v50  ;;  %v588_v32 = vmul.f32 %v1493_v18, %v2103_v51  ;;  %v598_v50 = vmul.f32 %v1493_v18, %v2157_v5 }
  0xf9   : > { %814 = vst [vmem:[%s1533_s6 + $0x318] sm:$0xff] %v558_v33  ;;  %815 = vst [vmem:[%s1533_s6 + $0x320] sm:$0xff] %v559_v38  ;;  %v2199_v20 = vld [vmem:[%s1466_s18 + $0x488] sm:$0xff]  ;;  %v2202_v21 = vld [vmem:[%s1466_s18 + $0x490] sm:$0xff]  ;;  %v589_v33 = vmul.f32 %v1493_v18, %v2106_v52 }
  0xfa   : > { %816 = vst [vmem:[%s1533_s6 + $0x328] sm:$0xff] %v560_v39  ;;  %817 = vst [vmem:[%s1533_s6 + $0x330] sm:$0xff] %v561_v40  ;;  %v2205_v22 = vld [vmem:[%s1466_s18 + $0x498] sm:$0xff]  ;;  %v2220_v27 = vld [vmem:[%s1466_s18 + $0x4a0] sm:$0xff]  ;;  %v591_v39 = vmul.f32 %v1493_v18, %v2124_v58  ;;  %v592_v40 = vmul.f32 %v1493_v18, %v2127_v59  ;;  %v602_v58 = vmul.f32 %v1493_v18, %v2181_v13 }
  0xfb   : > { %818 = vst [vmem:[%s1533_s6 + $0x338] sm:$0xff] %v562_v41  ;;  %819 = vst [vmem:[%s1533_s6 + $0x340] sm:$0xff] %v563_v46  ;;  %v2223_v28 = vld [vmem:[%s1466_s18 + $0x4a8] sm:$0xff]  ;;  %v2226_v29 = vld [vmem:[%s1466_s18 + $0x4b0] sm:$0xff]  ;;  %v593_v41 = vmul.f32 %v1493_v18, %v2130_v60 }
  0xfc   : > { %820 = vst [vmem:[%s1533_s6 + $0x348] sm:$0xff] %v564_v47  ;;  %821 = vst [vmem:[%s1533_s6 + $0x350] sm:$0xff] %v565_v48  ;;  %v2229_v30 = vld [vmem:[%s1466_s18 + $0x4b8] sm:$0xff]  ;;  %v2244_v35 = vld [vmem:[%s1466_s18 + $0x4c0] sm:$0xff]  ;;  %v595_v47 = vmul.f32 %v1493_v18, %v2148_v2  ;;  %v596_v48 = vmul.f32 %v1493_v18, %v2151_v3  ;;  %v606_v2 = vmul.f32 %v1493_v18, %v2205_v22 }
  0xfd   : > { %822 = vst [vmem:[%s1533_s6 + $0x358] sm:$0xff] %v566_v49  ;;  %823 = vst [vmem:[%s1533_s6 + $0x360] sm:$0xff] %v567_v54  ;;  %v2247_v36 = vld [vmem:[%s1466_s18 + $0x4c8] sm:$0xff]  ;;  %v2250_v37 = vld [vmem:[%s1466_s18 + $0x4d0] sm:$0xff]  ;;  %v597_v49 = vmul.f32 %v1493_v18, %v2154_v4 }
  0xfe   : > { %824 = vst [vmem:[%s1533_s6 + $0x368] sm:$0xff] %v568_v55  ;;  %825 = vst [vmem:[%s1533_s6 + $0x370] sm:$0xff] %v569_v56  ;;  %v2253_v38 = vld [vmem:[%s1466_s18 + $0x4d8] sm:$0xff]  ;;  %v2268_v43 = vld [vmem:[%s1466_s18 + $0x4e0] sm:$0xff]  ;;  %v599_v55 = vmul.f32 %v1493_v18, %v2172_v10  ;;  %v600_v56 = vmul.f32 %v1493_v18, %v2175_v11  ;;  %v610_v10 = vmul.f32 %v1493_v18, %v2229_v30 }
  0xff   : > { %826 = vst [vmem:[%s1533_s6 + $0x378] sm:$0xff] %v570_v57  ;;  %827 = vst [vmem:[%s1533_s6 + $0x380] sm:$0xff] %v571_v62  ;;  %v2271_v44 = vld [vmem:[%s1466_s18 + $0x4e8] sm:$0xff]  ;;  %v2274_v45 = vld [vmem:[%s1466_s18 + $0x4f0] sm:$0xff]  ;;  %v601_v57 = vmul.f32 %v1493_v18, %v2178_v12 }
 0x100   : > { %828 = vst [vmem:[%s1533_s6 + $0x388] sm:$0xff] %v572_v63  ;;  %829 = vst [vmem:[%s1533_s6 + $0x390] sm:$0xff] %v573_v0  ;;  %v2277_v46 = vld [vmem:[%s1466_s18 + $0x4f8] sm:$0xff]  ;;  %v2292_v51 = vld [vmem:[%s1466_s18 + $0x500] sm:$0xff]  ;;  %v603_v63 = vmul.f32 %v1493_v18, %v2196_v19  ;;  %v604_v0 = vmul.f32 %v1493_v18, %v2199_v20  ;;  %v614_v19 = vmul.f32 %v1493_v18, %v2253_v38 }
 0x101   : > { %830 = vst [vmem:[%s1533_s6 + $0x398] sm:$0xff] %v574_v1  ;;  %831 = vst [vmem:[%s1533_s6 + $0x3a0] sm:$0xff] %v575_v6  ;;  %v2295_v52 = vld [vmem:[%s1466_s18 + $0x508] sm:$0xff]  ;;  %v2298_v53 = vld [vmem:[%s1466_s18 + $0x510] sm:$0xff]  ;;  %v605_v1 = vmul.f32 %v1493_v18, %v2202_v21 }
 0x102   : > { %832 = vst [vmem:[%s1533_s6 + $0x3a8] sm:$0xff] %v576_v7  ;;  %833 = vst [vmem:[%s1533_s6 + $0x3b0] sm:$0xff] %v577_v8  ;;  %v2301_v54 = vld [vmem:[%s1466_s18 + $0x518] sm:$0xff]  ;;  %v2316_v59 = vld [vmem:[%s1466_s18 + $0x520] sm:$0xff]  ;;  %v607_v7 = vmul.f32 %v1493_v18, %v2220_v27  ;;  %v608_v8 = vmul.f32 %v1493_v18, %v2223_v28  ;;  %v618_v27 = vmul.f32 %v1493_v18, %v2277_v46 }
 0x103   : > { %834 = vst [vmem:[%s1533_s6 + $0x3b8] sm:$0xff] %v578_v9  ;;  %835 = vst [vmem:[%s1533_s6 + $0x3c0] sm:$0xff] %v579_v14  ;;  %v2319_v60 = vld [vmem:[%s1466_s18 + $0x528] sm:$0xff]  ;;  %v2322_v61 = vld [vmem:[%s1466_s18 + $0x530] sm:$0xff]  ;;  %v609_v9 = vmul.f32 %v1493_v18, %v2226_v29 }
 0x104   : > { %836 = vst [vmem:[%s1533_s6 + $0x3c8] sm:$0xff] %v580_v15  ;;  %837 = vst [vmem:[%s1533_s6 + $0x3d0] sm:$0xff] %v581_v16  ;;  %v2325_v62 = vld [vmem:[%s1466_s18 + $0x538] sm:$0xff]  ;;  %v2340_v3 = vld [vmem:[%s1466_s18 + $0x540] sm:$0xff]  ;;  %v611_v15 = vmul.f32 %v1493_v18, %v2244_v35  ;;  %v612_v16 = vmul.f32 %v1493_v18, %v2247_v36  ;;  %v622_v35 = vmul.f32 %v1493_v18, %v2301_v54 }
 0x105   : > { %838 = vst [vmem:[%s1533_s6 + $0x3d8] sm:$0xff] %v582_v17  ;;  %839 = vst [vmem:[%s1533_s6 + $0x3e0] sm:$0xff] %v583_v23  ;;  %v2343_v4 = vld [vmem:[%s1466_s18 + $0x548] sm:$0xff]  ;;  %v2346_v5 = vld [vmem:[%s1466_s18 + $0x550] sm:$0xff]  ;;  %v613_v17 = vmul.f32 %v1493_v18, %v2250_v37 }
 0x106   : > { %840 = vst [vmem:[%s1533_s6 + $0x3e8] sm:$0xff] %v584_v24  ;;  %841 = vst [vmem:[%s1533_s6 + $0x3f0] sm:$0xff] %v585_v25  ;;  %v2349_v6 = vld [vmem:[%s1466_s18 + $0x558] sm:$0xff]  ;;  %v2364_v11 = vld [vmem:[%s1466_s18 + $0x560] sm:$0xff]  ;;  %v615_v24 = vmul.f32 %v1493_v18, %v2268_v43  ;;  %v616_v25 = vmul.f32 %v1493_v18, %v2271_v44  ;;  %v626_v43 = vmul.f32 %v1493_v18, %v2325_v62 }
 0x107   : > { %842 = vst [vmem:[%s1533_s6 + $0x3f8] sm:$0xff] %v586_v26  ;;  %843 = vst [vmem:[%s1533_s6 + $0x400] sm:$0xff] %v587_v31  ;;  %v2367_v12 = vld [vmem:[%s1466_s18 + $0x568] sm:$0xff]  ;;  %v2370_v13 = vld [vmem:[%s1466_s18 + $0x570] sm:$0xff]  ;;  %v617_v26 = vmul.f32 %v1493_v18, %v2274_v45 }
 0x108   : > { %844 = vst [vmem:[%s1533_s6 + $0x408] sm:$0xff] %v588_v32  ;;  %845 = vst [vmem:[%s1533_s6 + $0x410] sm:$0xff] %v589_v33  ;;  %v2373_v14 = vld [vmem:[%s1466_s18 + $0x578] sm:$0xff]  ;;  %v2388_v20 = vld [vmem:[%s1466_s18 + $0x580] sm:$0xff]  ;;  %v619_v32 = vmul.f32 %v1493_v18, %v2292_v51  ;;  %v620_v33 = vmul.f32 %v1493_v18, %v2295_v52  ;;  %v630_v51 = vmul.f32 %v1493_v18, %v2349_v6 }
 0x109   : > { %846 = vst [vmem:[%s1533_s6 + $0x418] sm:$0xff] %v590_v34  ;;  %847 = vst [vmem:[%s1533_s6 + $0x420] sm:$0xff] %v591_v39  ;;  %v2391_v21 = vld [vmem:[%s1466_s18 + $0x588] sm:$0xff]  ;;  %v2394_v22 = vld [vmem:[%s1466_s18 + $0x590] sm:$0xff]  ;;  %v621_v34 = vmul.f32 %v1493_v18, %v2298_v53 }
 0x10a   : > { %848 = vst [vmem:[%s1533_s6 + $0x428] sm:$0xff] %v592_v40  ;;  %849 = vst [vmem:[%s1533_s6 + $0x430] sm:$0xff] %v593_v41  ;;  %v2397_v23 = vld [vmem:[%s1466_s18 + $0x598] sm:$0xff]  ;;  %v2412_v28 = vld [vmem:[%s1466_s18 + $0x5a0] sm:$0xff]  ;;  %v623_v40 = vmul.f32 %v1493_v18, %v2316_v59  ;;  %v624_v41 = vmul.f32 %v1493_v18, %v2319_v60  ;;  %v634_v59 = vmul.f32 %v1493_v18, %v2373_v14 }
 0x10b   : > { %850 = vst [vmem:[%s1533_s6 + $0x438] sm:$0xff] %v594_v42  ;;  %851 = vst [vmem:[%s1533_s6 + $0x440] sm:$0xff] %v595_v47  ;;  %v2415_v29 = vld [vmem:[%s1466_s18 + $0x5a8] sm:$0xff]  ;;  %v2418_v30 = vld [vmem:[%s1466_s18 + $0x5b0] sm:$0xff]  ;;  %v625_v42 = vmul.f32 %v1493_v18, %v2322_v61 }
 0x10c   : > { %852 = vst [vmem:[%s1533_s6 + $0x448] sm:$0xff] %v596_v48  ;;  %853 = vst [vmem:[%s1533_s6 + $0x450] sm:$0xff] %v597_v49  ;;  %v2421_v31 = vld [vmem:[%s1466_s18 + $0x5b8] sm:$0xff]  ;;  %v2436_v36 = vld [vmem:[%s1466_s18 + $0x5c0] sm:$0xff]  ;;  %v627_v48 = vmul.f32 %v1493_v18, %v2340_v3  ;;  %v628_v49 = vmul.f32 %v1493_v18, %v2343_v4  ;;  %v638_v3 = vmul.f32 %v1493_v18, %v2397_v23 }
 0x10d   : > { %854 = vst [vmem:[%s1533_s6 + $0x458] sm:$0xff] %v598_v50  ;;  %855 = vst [vmem:[%s1533_s6 + $0x460] sm:$0xff] %v599_v55  ;;  %v2439_v37 = vld [vmem:[%s1466_s18 + $0x5c8] sm:$0xff]  ;;  %v2442_v38 = vld [vmem:[%s1466_s18 + $0x5d0] sm:$0xff]  ;;  %v629_v50 = vmul.f32 %v1493_v18, %v2346_v5 }
 0x10e   : > { %856 = vst [vmem:[%s1533_s6 + $0x468] sm:$0xff] %v600_v56  ;;  %857 = vst [vmem:[%s1533_s6 + $0x470] sm:$0xff] %v601_v57  ;;  %v2445_v39 = vld [vmem:[%s1466_s18 + $0x5d8] sm:$0xff]  ;;  %v2460_v44 = vld [vmem:[%s1466_s18 + $0x5e0] sm:$0xff]  ;;  %v631_v56 = vmul.f32 %v1493_v18, %v2364_v11  ;;  %v632_v57 = vmul.f32 %v1493_v18, %v2367_v12  ;;  %v642_v11 = vmul.f32 %v1493_v18, %v2421_v31 }
 0x10f   : > { %858 = vst [vmem:[%s1533_s6 + $0x478] sm:$0xff] %v602_v58  ;;  %859 = vst [vmem:[%s1533_s6 + $0x480] sm:$0xff] %v603_v63  ;;  %v2463_v45 = vld [vmem:[%s1466_s18 + $0x5e8] sm:$0xff]  ;;  %v2466_v46 = vld [vmem:[%s1466_s18 + $0x5f0] sm:$0xff]  ;;  %v633_v58 = vmul.f32 %v1493_v18, %v2370_v13 }
 0x110   : > { %860 = vst [vmem:[%s1533_s6 + $0x488] sm:$0xff] %v604_v0  ;;  %861 = vst [vmem:[%s1533_s6 + $0x490] sm:$0xff] %v605_v1  ;;  %v2469_v47 = vld [vmem:[%s1466_s18 + $0x5f8] sm:$0xff]  ;;  %v2484_v52 = vld [vmem:[%s1466_s18 + $0x600] sm:$0xff]  ;;  %v635_v0 = vmul.f32 %v1493_v18, %v2388_v20  ;;  %v636_v1 = vmul.f32 %v1493_v18, %v2391_v21  ;;  %v646_v20 = vmul.f32 %v1493_v18, %v2445_v39 }
 0x111   : > { %862 = vst [vmem:[%s1533_s6 + $0x498] sm:$0xff] %v606_v2  ;;  %863 = vst [vmem:[%s1533_s6 + $0x4a0] sm:$0xff] %v607_v7  ;;  %v2487_v53 = vld [vmem:[%s1466_s18 + $0x608] sm:$0xff]  ;;  %v2490_v54 = vld [vmem:[%s1466_s18 + $0x610] sm:$0xff]  ;;  %v637_v2 = vmul.f32 %v1493_v18, %v2394_v22 }
 0x112   : > { %864 = vst [vmem:[%s1533_s6 + $0x4a8] sm:$0xff] %v608_v8  ;;  %865 = vst [vmem:[%s1533_s6 + $0x4b0] sm:$0xff] %v609_v9  ;;  %v2493_v55 = vld [vmem:[%s1466_s18 + $0x618] sm:$0xff]  ;;  %v2508_v60 = vld [vmem:[%s1466_s18 + $0x620] sm:$0xff]  ;;  %v639_v8 = vmul.f32 %v1493_v18, %v2412_v28  ;;  %v640_v9 = vmul.f32 %v1493_v18, %v2415_v29  ;;  %v650_v28 = vmul.f32 %v1493_v18, %v2469_v47 }
 0x113   : > { %866 = vst [vmem:[%s1533_s6 + $0x4b8] sm:$0xff] %v610_v10  ;;  %867 = vst [vmem:[%s1533_s6 + $0x4c0] sm:$0xff] %v611_v15  ;;  %v2511_v61 = vld [vmem:[%s1466_s18 + $0x628] sm:$0xff]  ;;  %v2514_v62 = vld [vmem:[%s1466_s18 + $0x630] sm:$0xff]  ;;  %v641_v10 = vmul.f32 %v1493_v18, %v2418_v30 }
 0x114   : > { %868 = vst [vmem:[%s1533_s6 + $0x4c8] sm:$0xff] %v612_v16  ;;  %869 = vst [vmem:[%s1533_s6 + $0x4d0] sm:$0xff] %v613_v17  ;;  %v2517_v63 = vld [vmem:[%s1466_s18 + $0x638] sm:$0xff]  ;;  %v2532_v4 = vld [vmem:[%s1466_s18 + $0x640] sm:$0xff]  ;;  %v643_v16 = vmul.f32 %v1493_v18, %v2436_v36  ;;  %v644_v17 = vmul.f32 %v1493_v18, %v2439_v37  ;;  %v654_v36 = vmul.f32 %v1493_v18, %v2493_v55 }
 0x115   : > { %870 = vst [vmem:[%s1533_s6 + $0x4d8] sm:$0xff] %v614_v19  ;;  %871 = vst [vmem:[%s1533_s6 + $0x4e0] sm:$0xff] %v615_v24  ;;  %v2535_v5 = vld [vmem:[%s1466_s18 + $0x648] sm:$0xff]  ;;  %v2538_v6 = vld [vmem:[%s1466_s18 + $0x650] sm:$0xff]  ;;  %v645_v19 = vmul.f32 %v1493_v18, %v2442_v38 }
 0x116   : > { %872 = vst [vmem:[%s1533_s6 + $0x4e8] sm:$0xff] %v616_v25  ;;  %873 = vst [vmem:[%s1533_s6 + $0x4f0] sm:$0xff] %v617_v26  ;;  %v2541_v7 = vld [vmem:[%s1466_s18 + $0x658] sm:$0xff]  ;;  %v2556_v12 = vld [vmem:[%s1466_s18 + $0x660] sm:$0xff]  ;;  %v647_v25 = vmul.f32 %v1493_v18, %v2460_v44  ;;  %v648_v26 = vmul.f32 %v1493_v18, %v2463_v45  ;;  %v658_v44 = vmul.f32 %v1493_v18, %v2517_v63 }
 0x117   : > { %874 = vst [vmem:[%s1533_s6 + $0x4f8] sm:$0xff] %v618_v27  ;;  %875 = vst [vmem:[%s1533_s6 + $0x500] sm:$0xff] %v619_v32  ;;  %v2559_v13 = vld [vmem:[%s1466_s18 + $0x668] sm:$0xff]  ;;  %v2562_v14 = vld [vmem:[%s1466_s18 + $0x670] sm:$0xff]  ;;  %v649_v27 = vmul.f32 %v1493_v18, %v2466_v46 }
 0x118   : > { %876 = vst [vmem:[%s1533_s6 + $0x508] sm:$0xff] %v620_v33  ;;  %877 = vst [vmem:[%s1533_s6 + $0x510] sm:$0xff] %v621_v34  ;;  %v2565_v15 = vld [vmem:[%s1466_s18 + $0x678] sm:$0xff]  ;;  %v2580_v21 = vld [vmem:[%s1466_s18 + $0x680] sm:$0xff]  ;;  %v651_v33 = vmul.f32 %v1493_v18, %v2484_v52  ;;  %v652_v34 = vmul.f32 %v1493_v18, %v2487_v53  ;;  %v662_v52 = vmul.f32 %v1493_v18, %v2541_v7 }
 0x119   : > { %878 = vst [vmem:[%s1533_s6 + $0x518] sm:$0xff] %v622_v35  ;;  %879 = vst [vmem:[%s1533_s6 + $0x520] sm:$0xff] %v623_v40  ;;  %v2583_v22 = vld [vmem:[%s1466_s18 + $0x688] sm:$0xff]  ;;  %v2586_v23 = vld [vmem:[%s1466_s18 + $0x690] sm:$0xff]  ;;  %v653_v35 = vmul.f32 %v1493_v18, %v2490_v54 }
 0x11a   : > { %880 = vst [vmem:[%s1533_s6 + $0x528] sm:$0xff] %v624_v41  ;;  %881 = vst [vmem:[%s1533_s6 + $0x530] sm:$0xff] %v625_v42  ;;  %v2589_v24 = vld [vmem:[%s1466_s18 + $0x698] sm:$0xff]  ;;  %v2604_v29 = vld [vmem:[%s1466_s18 + $0x6a0] sm:$0xff]  ;;  %v655_v41 = vmul.f32 %v1493_v18, %v2508_v60  ;;  %v656_v42 = vmul.f32 %v1493_v18, %v2511_v61  ;;  %v666_v60 = vmul.f32 %v1493_v18, %v2565_v15 }
 0x11b   : > { %882 = vst [vmem:[%s1533_s6 + $0x538] sm:$0xff] %v626_v43  ;;  %883 = vst [vmem:[%s1533_s6 + $0x540] sm:$0xff] %v627_v48  ;;  %v2607_v30 = vld [vmem:[%s1466_s18 + $0x6a8] sm:$0xff]  ;;  %v2610_v31 = vld [vmem:[%s1466_s18 + $0x6b0] sm:$0xff]  ;;  %v657_v43 = vmul.f32 %v1493_v18, %v2514_v62 }
 0x11c   : > { %884 = vst [vmem:[%s1533_s6 + $0x548] sm:$0xff] %v628_v49  ;;  %885 = vst [vmem:[%s1533_s6 + $0x550] sm:$0xff] %v629_v50  ;;  %v2613_v32 = vld [vmem:[%s1466_s18 + $0x6b8] sm:$0xff]  ;;  %v413_v37 = vld [vmem:[%s1466_s18 + $0x6c0] sm:$0xff]  ;;  %v659_v49 = vmul.f32 %v1493_v18, %v2532_v4  ;;  %v660_v50 = vmul.f32 %v1493_v18, %v2535_v5  ;;  %v670_v4 = vmul.f32 %v1493_v18, %v2589_v24 }
 0x11d   : > { %886 = vst [vmem:[%s1533_s6 + $0x558] sm:$0xff] %v630_v51  ;;  %887 = vst [vmem:[%s1533_s6 + $0x560] sm:$0xff] %v631_v56  ;;  %v414_v38 = vld [vmem:[%s1466_s18 + $0x6c8] sm:$0xff]  ;;  %v415_v39 = vld [vmem:[%s1466_s18 + $0x6d0] sm:$0xff]  ;;  %v661_v51 = vmul.f32 %v1493_v18, %v2538_v6  ;;  %v675_v15 = vmul.f32 %v1493_v18, %v413_v37 }
 0x11e   : > { %888 = vst [vmem:[%s1533_s6 + $0x568] sm:$0xff] %v632_v57  ;;  %889 = vst [vmem:[%s1533_s6 + $0x570] sm:$0xff] %v633_v58  ;;  %v416_v40 = vld [vmem:[%s1466_s18 + $0x6d8] sm:$0xff]  ;;  %v2644_v45 = vld [vmem:[%s1466_s18 + $0x6e0] sm:$0xff]  ;;  %v663_v57 = vmul.f32 %v1493_v18, %v2556_v12  ;;  %v664_v58 = vmul.f32 %v1493_v18, %v2559_v13 }
 0x11f   : > { %890 = vst [vmem:[%s1533_s6 + $0x578] sm:$0xff] %v634_v59  ;;  %891 = vst [vmem:[%s1533_s6 + $0x580] sm:$0xff] %v635_v0  ;;  %v2647_v46 = vld [vmem:[%s1466_s18 + $0x6e8] sm:$0xff]  ;;  %v2650_v47 = vld [vmem:[%s1466_s18 + $0x6f0] sm:$0xff]  ;;  %v665_v59 = vmul.f32 %v1493_v18, %v2562_v14 }
 0x120   : > { %892 = vst [vmem:[%s1533_s6 + $0x588] sm:$0xff] %v636_v1  ;;  %893 = vst [vmem:[%s1533_s6 + $0x590] sm:$0xff] %v637_v2  ;;  %v2653_v48 = vld [vmem:[%s1466_s18 + $0x6f8] sm:$0xff]  ;;  %v421_v53 = vld [vmem:[%s1466_s18 + $0x700] sm:$0xff]  ;;  %v667_v1 = vmul.f32 %v1493_v18, %v2580_v21  ;;  %v668_v2 = vmul.f32 %v1493_v18, %v2583_v22  ;;  %v680_v24 = vmul.f32 %v1493_v18, %v2647_v46 }
 0x121   : > { %894 = vst [vmem:[%s1533_s6 + $0x598] sm:$0xff] %v638_v3  ;;  %895 = vst [vmem:[%s1533_s6 + $0x5a0] sm:$0xff] %v639_v8  ;;  %v422_v54 = vld [vmem:[%s1466_s18 + $0x708] sm:$0xff]  ;;  %v423_v55 = vld [vmem:[%s1466_s18 + $0x710] sm:$0xff]  ;;  %v669_v3 = vmul.f32 %v1493_v18, %v2586_v23  ;;  %v671_v8 = vmul.f32 %v1493_v18, %v2604_v29  ;;  %v679_v23 = vmul.f32 %v1493_v18, %v2644_v45 }
 0x122   : > { %896 = vst [vmem:[%s1533_s6 + $0x5a8] sm:$0xff] %v640_v9  ;;  %897 = vst [vmem:[%s1533_s6 + $0x5b0] sm:$0xff] %v641_v10  ;;  %v424_v56 = vld [vmem:[%s1466_s18 + $0x718] sm:$0xff]  ;;  %v425_v61 = vld [vmem:[%s1466_s18 + $0x720] sm:$0xff]  ;;  %v672_v9 = vmul.f32 %v1493_v18, %v2607_v30  ;;  %v673_v10 = vmul.f32 %v1493_v18, %v2610_v31  ;;  %v683_v30 = vmul.f32 %v1493_v18, %v421_v53 }
 0x123   : > { %898 = vst [vmem:[%s1533_s6 + $0x5b8] sm:$0xff] %v642_v11  ;;  %899 = vst [vmem:[%s1533_s6 + $0x5c0] sm:$0xff] %v643_v16  ;;  %v426_v62 = vld [vmem:[%s1466_s18 + $0x728] sm:$0xff]  ;;  %v427_v63 = vld [vmem:[%s1466_s18 + $0x730] sm:$0xff]  ;;  %v674_v11 = vmul.f32 %v1493_v18, %v2613_v32  ;;  %v676_v16 = vmul.f32 %v1493_v18, %v414_v38  ;;  %v684_v31 = vmul.f32 %v1493_v18, %v422_v54 }
 0x124   : > { %900 = vst [vmem:[%s1533_s6 + $0x5c8] sm:$0xff] %v644_v17  ;;  %901 = vst [vmem:[%s1533_s6 + $0x5d0] sm:$0xff] %v645_v19  ;;  %v428_v0 = vld [vmem:[%s1466_s18 + $0x738] sm:$0xff]  ;;  %v429_v5 = vld [vmem:[%s1466_s18 + $0x740] sm:$0xff]  ;;  %v677_v17 = vmul.f32 %v1493_v18, %v415_v39  ;;  %v678_v19 = vmul.f32 %v1493_v18, %v416_v40  ;;  %v685_v32 = vmul.f32 %v1493_v18, %v423_v55 }
 0x125   : > { %902 = vst [vmem:[%s1533_s6 + $0x5d8] sm:$0xff] %v646_v20  ;;  %903 = vst [vmem:[%s1533_s6 + $0x5e0] sm:$0xff] %v647_v25  ;;  %v430_v6 = vld [vmem:[%s1466_s18 + $0x748] sm:$0xff]  ;;  %v431_v7 = vld [vmem:[%s1466_s18 + $0x750] sm:$0xff]  ;;  %v681_v25 = vmul.f32 %v1493_v18, %v2650_v47  ;;  %v687_v37 = vmul.f32 %v1493_v18, %v425_v61  ;;  %v688_v38 = vmul.f32 %v1493_v18, %v426_v62 }
 0x126   : > { %904 = vst [vmem:[%s1533_s6 + $0x5e8] sm:$0xff] %v648_v26  ;;  %905 = vst [vmem:[%s1533_s6 + $0x5f0] sm:$0xff] %v649_v27  ;;  %v432_v12 = vld [vmem:[%s1466_s18 + $0x758] sm:$0xff]  ;;  %v433_v13 = vld [vmem:[%s1466_s18 + $0x760] sm:$0xff]  ;;  %v682_v26 = vmul.f32 %v1493_v18, %v2653_v48  ;;  %v689_v39 = vmul.f32 %v1493_v18, %v427_v63  ;;  %v690_v40 = vmul.f32 %v1493_v18, %v428_v0 }
 0x127   : > { %906 = vst [vmem:[%s1533_s6 + $0x5f8] sm:$0xff] %v650_v28  ;;  %907 = vst [vmem:[%s1533_s6 + $0x600] sm:$0xff] %v651_v33  ;;  %v434_v14 = vld [vmem:[%s1466_s18 + $0x768] sm:$0xff]  ;;  %v435_v20 = vld [vmem:[%s1466_s18 + $0x770] sm:$0xff]  ;;  %v686_v33 = vmul.f32 %v1493_v18, %v424_v56  ;;  %v692_v45 = vmul.f32 %v1493_v18, %v430_v6  ;;  %v693_v46 = vmul.f32 %v1493_v18, %v431_v7 }
 0x128   : > { %908 = vst [vmem:[%s1533_s6 + $0x608] sm:$0xff] %v652_v34  ;;  %909 = vst [vmem:[%s1533_s6 + $0x610] sm:$0xff] %v653_v35  ;;  %v436_v21 = vld [vmem:[%s1466_s18 + $0x778] sm:$0xff]  ;;  %v437_v22 = vld [vmem:[%s1466_s18 + $0x780] sm:$0xff]  ;;  %v694_v47 = vmul.f32 %v1493_v18, %v432_v12  ;;  %v697_v53 = vmul.f32 %v1493_v18, %v435_v20 }
 0x129   : > { %910 = vst [vmem:[%s1533_s6 + $0x618] sm:$0xff] %v654_v36  ;;  %911 = vst [vmem:[%s1533_s6 + $0x620] sm:$0xff] %v655_v41  ;;  %v438_v27 = vld [vmem:[%s1466_s18 + $0x788] sm:$0xff]  ;;  %v439_v28 = vld [vmem:[%s1466_s18 + $0x790] sm:$0xff]  ;;  %v698_v54 = vmul.f32 %v1493_v18, %v436_v21 }
 0x12a   : > { %912 = vst [vmem:[%s1533_s6 + $0x628] sm:$0xff] %v656_v42  ;;  %913 = vst [vmem:[%s1533_s6 + $0x630] sm:$0xff] %v657_v43  ;;  %v440_v29 = vld [vmem:[%s1466_s18 + $0x798] sm:$0xff]  ;;  %v441_v34 = vld [vmem:[%s1466_s18 + $0x7a0] sm:$0xff] }
 0x12b   : > { %914 = vst [vmem:[%s1533_s6 + $0x638] sm:$0xff] %v658_v44  ;;  %915 = vst [vmem:[%s1533_s6 + $0x640] sm:$0xff] %v659_v49  ;;  %v442_v35 = vld [vmem:[%s1466_s18 + $0x7a8] sm:$0xff]  ;;  %v443_v36 = vld [vmem:[%s1466_s18 + $0x7b0] sm:$0xff]  ;;  %v691_v44 = vmul.f32 %v1493_v18, %v429_v5  ;;  %v702_v61 = vmul.f32 %v1493_v18, %v440_v29  ;;  %v703_v62 = vmul.f32 %v1493_v18, %v441_v34 }
 0x12c   : > { %916 = vst [vmem:[%s1533_s6 + $0x648] sm:$0xff] %v660_v50  ;;  %917 = vst [vmem:[%s1533_s6 + $0x650] sm:$0xff] %v661_v51  ;;  %v444_v41 = vld [vmem:[%s1466_s18 + $0x7b8] sm:$0xff]  ;;  %v445_v42 = vld [vmem:[%s1466_s18 + $0x7c0] sm:$0xff]  ;;  %v695_v51 = vmul.f32 %v1493_v18, %v433_v13  ;;  %v704_v63 = vmul.f32 %v1493_v18, %v442_v35  ;;  %v705_v0 = vmul.f32 %v1493_v18, %v443_v36 }
 0x12d   : > { %918 = vst [vmem:[%s1533_s6 + $0x658] sm:$0xff] %v662_v52  ;;  %919 = vst [vmem:[%s1533_s6 + $0x660] sm:$0xff] %v663_v57  ;;  %v446_v43 = vld [vmem:[%s1466_s18 + $0x7c8] sm:$0xff]  ;;  %v447_v48 = vld [vmem:[%s1466_s18 + $0x7d0] sm:$0xff]  ;;  %v696_v52 = vmul.f32 %v1493_v18, %v434_v14 }
 0x12e   : > { %920 = vst [vmem:[%s1533_s6 + $0x668] sm:$0xff] %v664_v58  ;;  %921 = vst [vmem:[%s1533_s6 + $0x670] sm:$0xff] %v665_v59  ;;  %v448_v49 = vld [vmem:[%s1466_s18 + $0x7d8] sm:$0xff]  ;;  %v449_v50 = vld [vmem:[%s1466_s18 + $0x7e0] sm:$0xff]  ;;  %v699_v58 = vmul.f32 %v1493_v18, %v437_v22  ;;  %v700_v59 = vmul.f32 %v1493_v18, %v438_v27 }
 0x12f   : > { %922 = vst [vmem:[%s1533_s6 + $0x678] sm:$0xff] %v666_v60  ;;  %923 = vst [vmem:[%s1533_s6 + $0x680] sm:$0xff] %v667_v1  ;;  %v450_v55 = vld [vmem:[%s1466_s18 + $0x7e8] sm:$0xff]  ;;  %v451_v56 = vld [vmem:[%s1466_s18 + $0x7f0] sm:$0xff]  ;;  %v701_v60 = vmul.f32 %v1493_v18, %v439_v28  ;;  %v706_v1 = vmul.f32 %v1493_v18, %v444_v41  ;;  %v710_v5 = vmul.f32 %v1493_v18, %v448_v49 }
 0x130   : > { %924 = vst [vmem:[%s1533_s6 + $0x688] sm:$0xff] %v668_v2  ;;  %925 = vst [vmem:[%s1533_s6 + $0x690] sm:$0xff] %v669_v3  ;;  %v452_v57 = vld [vmem:[%s1466_s18 + $0x7f8] sm:$0xff]  ;;  %v707_v2 = vmul.f32 %v1493_v18, %v445_v42  ;;  %v708_v3 = vmul.f32 %v1493_v18, %v446_v43  ;;  %v711_v6 = vmul.f32 %v1493_v18, %v449_v50  ;;  %s1215_s18 = scalar_lea.vmem %s2834_s13, 32768 }
 0x131   : > { %926 = vst [vmem:[%s1533_s6 + $0x698] sm:$0xff] %v670_v4  ;;  %927 = vst [vmem:[%s1533_s6 + $0x6a0] sm:$0xff] %v671_v8  ;;  %v709_v4 = vmul.f32 %v1493_v18, %v447_v48  ;;  %v712_v7 = vmul.f32 %v1493_v18, %v450_v55  ;;  %v713_v8 = vmul.f32 %v1493_v18, %v451_v56  ;;  %p1216_p8 = scmp.ne.s32.totalorder %s2834_s13, %s1215_s18  ;;  %p1223_p4 = scmp.lt.s32.totalorder %s1221_s21, %s1215_s18 }
 0x132   : > { %928 = vst [vmem:[%s1533_s6 + $0x6a8] sm:$0xff] %v672_v9  ;;  %929 = vst [vmem:[%s1533_s6 + $0x6b0] sm:$0xff] %v673_v10  ;;  %v714_v9 = vmul.f32 %v1493_v18, %v452_v57 }
 0x133   : > { %930 = vst [vmem:[%s1533_s6 + $0x6b8] sm:$0xff] %v674_v11  ;;  %931 = vst [vmem:[%s1533_s6 + $0x6c0] sm:$0xff] %v675_v15  ;;  %p1217_p0 = pnand %p1216_p8, %p2905_p12  ;;  %p1224_p5 = por %p1223_p4, %p1222_p13 }
 0x134   : > { %932 = vst [vmem:[%s1533_s6 + $0x6c8] sm:$0xff] %v676_v16  ;;  %933 = vst [vmem:[%s1533_s6 + $0x6d0] sm:$0xff] %v677_v17 }
 0x135   : > { %934 = vst [vmem:[%s1533_s6 + $0x6d8] sm:$0xff] %v678_v19  ;;  %935 = vst [vmem:[%s1533_s6 + $0x6e0] sm:$0xff] %v679_v23  ;;  %p1218_p6 = pneg %p1217_p0 }
 0x136   : > { %936 = vst [vmem:[%s1533_s6 + $0x6e8] sm:$0xff] %v680_v24  ;;  %937 = vst [vmem:[%s1533_s6 + $0x6f0] sm:$0xff] %v681_v25 }
 0x137   : > { %938 = vst [vmem:[%s1533_s6 + $0x6f8] sm:$0xff] %v682_v26  ;;  %939 = vst [vmem:[%s1533_s6 + $0x700] sm:$0xff] %v683_v30  ;;  %p1225_p7 = pnand %p1224_p5, %p1218_p6 }
 0x138   : > { %940 = vst [vmem:[%s1533_s6 + $0x708] sm:$0xff] %v684_v31  ;;  %941 = vst [vmem:[%s1533_s6 + $0x710] sm:$0xff] %v685_v32 }
 0x139   : > { %942 = vst [vmem:[%s1533_s6 + $0x718] sm:$0xff] %v686_v33  ;;  %943 = vst [vmem:[%s1533_s6 + $0x720] sm:$0xff] %v687_v37 }
 0x13a   : > { %944 = vst [vmem:[%s1533_s6 + $0x728] sm:$0xff] %v688_v38  ;;  %945 = vst [vmem:[%s1533_s6 + $0x730] sm:$0xff] %v689_v39 }
 0x13b   : > { %946 = vst [vmem:[%s1533_s6 + $0x738] sm:$0xff] %v690_v40  ;;  %947 = vst [vmem:[%s1533_s6 + $0x740] sm:$0xff] %v691_v44 }
 0x13c   : > { %948 = vst [vmem:[%s1533_s6 + $0x748] sm:$0xff] %v692_v45  ;;  %949 = vst [vmem:[%s1533_s6 + $0x750] sm:$0xff] %v693_v46 }
 0x13d   : > { %950 = vst [vmem:[%s1533_s6 + $0x758] sm:$0xff] %v694_v47  ;;  %951 = vst [vmem:[%s1533_s6 + $0x760] sm:$0xff] %v695_v51 }
 0x13e   : > { %952 = vst [vmem:[%s1533_s6 + $0x768] sm:$0xff] %v696_v52  ;;  %953 = vst [vmem:[%s1533_s6 + $0x770] sm:$0xff] %v697_v53 }
 0x13f   : > { %954 = vst [vmem:[%s1533_s6 + $0x778] sm:$0xff] %v698_v54  ;;  %955 = vst [vmem:[%s1533_s6 + $0x780] sm:$0xff] %v699_v58 }
 0x140   : > { %956 = vst [vmem:[%s1533_s6 + $0x788] sm:$0xff] %v700_v59  ;;  %957 = vst [vmem:[%s1533_s6 + $0x790] sm:$0xff] %v701_v60 }
 0x141   : > { %958 = vst [vmem:[%s1533_s6 + $0x798] sm:$0xff] %v702_v61  ;;  %959 = vst [vmem:[%s1533_s6 + $0x7a0] sm:$0xff] %v703_v62 }
 0x142   : > { %960 = vst [vmem:[%s1533_s6 + $0x7a8] sm:$0xff] %v704_v63  ;;  %961 = vst [vmem:[%s1533_s6 + $0x7b0] sm:$0xff] %v705_v0 }
 0x143   : > { %962 = vst [vmem:[%s1533_s6 + $0x7b8] sm:$0xff] %v706_v1  ;;  %963 = vst [vmem:[%s1533_s6 + $0x7c0] sm:$0xff] %v707_v2 }
 0x144   : > { %964 = vst [vmem:[%s1533_s6 + $0x7c8] sm:$0xff] %v708_v3  ;;  %965 = vst [vmem:[%s1533_s6 + $0x7d0] sm:$0xff] %v709_v4 }
 0x145   : > { %966 = vst [vmem:[%s1533_s6 + $0x7d8] sm:$0xff] %v710_v5  ;;  %967 = vst [vmem:[%s1533_s6 + $0x7e0] sm:$0xff] %v711_v6 }
 0x146   : > { %968 = vst [vmem:[%s1533_s6 + $0x7e8] sm:$0xff] %v712_v7  ;;  %969 = vst [vmem:[%s1533_s6 + $0x7f0] sm:$0xff] %v713_v8 }
 0x147   : > { %970 = vst [vmem:[%s1533_s6 + $0x7f8] sm:$0xff] %v714_v9 }
 0x148   : > { %1228 = shalt.err (!%p1225_p7)
}
 0x149   : > { %s1229_s3 = scalar_lea.hbm %s2832_s23, 32768  ;;  %s1233_s6 = scalar_lea.hbm %s2896_s2, 262144 }
 0x14a   : > { %p1230_p10 = scmp.ne.s32.totalorder %s2832_s23, %s1229_s3  ;;  %p1234_p2 = scmp.lt.u32.totalorder %s2832_s23, %s2896_s2 }
 0x14b   : > { %p1235_p3 = scmp.lt.u32.totalorder %s1233_s6, %s1229_s3  ;;  %p1237_p8 = scmp.lt.u32.totalorder %s1229_s3, %s2832_s23 }
 0x14c   : > { %p1231_p11 = pnand %p1230_p10, %p2905_p12 }
 0x14d   : > { %p1236_p9 = por %p1235_p3, %p1234_p2 }
 0x14e   : > { %p1232_p1 = pneg %p1231_p11 }
 0x14f   : > { %p1238_p0 = por %p1237_p8, %p1236_p9 }
 0x151   : > { %p1239_p6 = pnand %p1238_p0, %p1232_p1 }
 0x153   : > { %1242 = shalt.err (!%p1239_p6)
}
 0x154   : > { %1107 = dma.vmem_to_hbm [thread:$0]  (%p2905_p12), %s2834_s13, 32768, %s2832_s23, %s972_s4  }
 0x155 PF: > { %p1118_p13 = scmp.ge.s32.totalorder %s1313_s16, 2  ;;  %s1000_s17 = sand.u32 1, %s1285_s9  }
 0x156   : > { %p2906_p4 = scmp.ne.s32.totalorder %s2901_s28, 0  ;;  %s1001_s12 = scalar_lea.sflag [#allocation4], %s1000_s17 }
 0x158   : > { %p1114_p5 = pnand %p1118_p13, %p2906_p4 }
 0x15a   : > { %1280 = dma.done.wait (!%p1114_p5), %s1001_s12, 32768  }
 0x15b   : > { %1282 = vsyncadd (!%p1114_p5), %s1001_s12, 4294934528  ;;  %s18_s16 = sadd.s32 1, %s1313_s16   ;;  %s2907_s9 = smov %s1289_s10 }
 0x15c   : > { %p15_p7 = scmp.ge.s32.totalorder %s18_s16, 10   ;;  %s2908_s10 = smov %s1293_s11 }
 0x15d   : > { %s2909_s11 = smov %s1411_s30  ;;  %s2910_s12 = smov %s1305_s14 }
 0x15e   : > { %s2911_s13 = smov %s1309_s15  ;;  %s2912_s14 = smov %s2915_s19 }
 0x15f   : > { %s2913_s15 = smov %s2919_s20  ;;  %17 = sbr.rel (!%p15_p7) target bundleno = 7 (0x7), region = 76 }
 0x166   :  { %1006 = vsyncpa [#allocation3], 1 }
 0x167   :  { %1008 = vsyncpa [#allocation3 + $0x1], 1 }
 0x168   :  { %1009 = vsyncpa [#allocation4], 1 }
 0x169   :  { %1011 = vsyncpa [#allocation4 + $0x1], 1 }

</bundles_post_ra>
